<compile_context>
chip_gen: v7x
topology: tpu7x:2x2x1
jax: 0.10.0
libtpu: 0.0.40
codegen_flags: <defaults>
</compile_context>

<pallas_src>
import jax
import jax.numpy as jnp
from jax.experimental import pallas as pl
from jax.experimental.pallas import tpu as pltpu


def _round_up(x, m):
    return (x + m - 1) // m * m


def _decoder_kernel(emb_ref, w_emb_ref, vis_ref, w_vis_ref, b_ref, w_hh_ref,
                    fc_w_ref, fc_b_ref, h0_ref, c0_ref,
                    logits_ref, h_out_ref, c_out_ref,
                    gates_x_ref, h_all_ref):
    """Decoder forward.  Grid axis 0 tiles the vocab (V).

    emb_ref:    (T*Bp, E)    token embeddings, time-major, batch padded to Bp
    w_emb_ref:  (E, 4*Hp)    embedding half of W_ih (gate blocks lane-aligned)
    vis_ref:    (Bp, C)      visual features (NOT broadcast over T)
    w_vis_ref:  (C, 4*Hp)    visual half of W_ih
    b_ref:      (1, 4*Hp)    combined bias (b_ih + b_hh), f32, zero in padding
    w_hh_ref:   (Hp, 4*Hp)   hidden-to-hidden weights
    fc_w_ref:   (Hp, tV)     one V tile of the fc weights
    fc_b_ref:   (1, tV)      one V tile of the fc bias (f32)
    h0_ref:     (Bp, Hp)     initial hidden state (f32)
    c0_ref:     (Bp, Hp)     initial cell state (f32)
    logits_ref: (T*Bp, tV)   one V tile of the per-step logits (time-major)
    h_out_ref:  (Bp, Hp)     final hidden state (f32)
    c_out_ref:  (Bp, Hp)     final cell state (f32)
    gates_x_ref:(T*Bp, 4*Hp) f32 scratch, emb @ W_emb   (persists across grid)
    h_all_ref:  (T*Bp, Hp)   scratch, all hidden states (persists across grid)
    """
    Bp, Hp = h0_ref.shape
    TB = gates_x_ref.shape[0]
    T = TB // Bp

    # Phases 1+2 run once, on the first V tile only; scratch persists.
    @pl.when(pl.program_id(0) == 0)
    def _recurrence():
        # ---- Phase 1a: token-embedding projection, one big MXU matmul. ----
        gates_x_ref[...] = jnp.dot(
            emb_ref[...], w_emb_ref[...], preferred_element_type=jnp.float32)
        # ---- Phase 1b: time-invariant visual projection + bias, ONCE. ----
        xb = (jnp.dot(vis_ref[...], w_vis_ref[...],
                      preferred_element_type=jnp.float32) + b_ref[...])
        w_hh = w_hh_ref[...]

        # ---- Phase 2: serial recurrence (h @ W_hh + elementwise only). ----
        def step(t, carry):
            h, c = carry
            row = pl.multiple_of(t * Bp, Bp)
            gates = (gates_x_ref[pl.ds(row, Bp), :] + xb
                     + jnp.dot(h.astype(w_hh.dtype), w_hh,
                               preferred_element_type=jnp.float32))
            # Gate slices are lane-aligned (Hp multiple of 128) -> free views.
            i_g = jax.nn.sigmoid(gates[:, 0 * Hp:1 * Hp])
            f_g = jax.nn.sigmoid(gates[:, 1 * Hp:2 * Hp])
            g_g = jnp.tanh(gates[:, 2 * Hp:3 * Hp])
            o_g = jax.nn.sigmoid(gates[:, 3 * Hp:4 * Hp])
            c_new = f_g * c + i_g * g_g
            h_new = o_g * jnp.tanh(c_new)
            h_all_ref[pl.ds(row, Bp), :] = h_new.astype(h_all_ref.dtype)
            return h_new, c_new

        # Fixed partial unroll: keeps the body visible to the LLO scheduler
        # for any T while bounding code size.
        h_last, c_last = jax.lax.fori_loop(
            0, T, step, (h0_ref[...], c0_ref[...]), unroll=8)
        h_out_ref[...] = h_last.astype(h_out_ref.dtype)
        c_out_ref[...] = c_last.astype(c_out_ref.dtype)

    # ---- Phase 3: one lane-dense V tile of the FC per grid step. ----
    logits_ref[...] = (
        jnp.dot(h_all_ref[...], fc_w_ref[...],
                preferred_element_type=jnp.float32)
        + fc_b_ref[...]).astype(logits_ref.dtype)


def _pad_gate_cols(w, H, Hp):
    """Re-layout (..., 4H) gate-blocked weights/bias to (..., 4Hp), each gate
    block placed at a lane-aligned offset g*Hp and zero-padded to width Hp."""
    if Hp == H:
        return w
    parts = []
    for g in range(4):
        blk = w[..., g * H:(g + 1) * H]
        pad = [(0, 0)] * (w.ndim - 1) + [(0, Hp - H)]
        parts.append(jnp.pad(blk, pad))
    return jnp.concatenate(parts, axis=-1)


def decoder_forward(params, vis_input, txt_input, init_state=None,
                    use_bf16=True, v_tile=512):
    """JAX/Pallas equivalent of Decoder.forward.

    vis_input: (B, encoder_out_dim) float32
    txt_input: (B, T) int32 token ids
    init_state: optional (h0, c0), each (1, B, H)
    use_bf16:  bf16 MXU operands (default); carries/gate math stay f32
    v_tile:    vocab tile width (multiple of 128).  512 fits v5e's scoped
               default comfortably; 1024-2048 is fine on v6e/v7x.
    returns (fc_output (B, T, V) f32, (h (1, B, H), c (1, B, H)))
    """
    emb = params["embedding"]          # (Vocab, E)
    w_ih = params["w_ih"]              # (D, 4H), rows ordered [vis(C); emb(E)]
    w_hh = params["w_hh"]              # (H, 4H)
    b = params["b"]                    # (4H,)   combined b_ih + b_hh
    fc_w = params["fc_w"]              # (H, Vocab)
    fc_b = params["fc_b"]              # (Vocab,)

    B, T = txt_input.shape
    H = w_hh.shape[0]
    V = fc_w.shape[1]
    E = emb.shape[1]
    C = vis_input.shape[-1]

    mxu_dtype = jnp.bfloat16 if use_bf16 else jnp.float32
    h_all_dtype = mxu_dtype

    # Row slabs align with the packed-tile granularity of h_all's dtype
    # (16 sublanes for bf16, 8 for f32) so per-step stores are full tiles.
    Bp = _round_up(B, 16 if use_bf16 else 8)
    Hp = _round_up(H, 128)                      # lane-aligned gate slices
    tV = min(_round_up(V, 128), _round_up(v_tile, 128))
    Vp = _round_up(V, tV)                       # Vp is a multiple of tV
    NV = Vp // tV
    TB = T * Bp

    # --- glue in plain JAX: token embeddings, time-major.  The visual
    # features are NOT broadcast over T; they are projected once in-kernel. ---
    emb_tm = jnp.take(emb, txt_input.T, axis=0).astype(jnp.float32)  # (T,B,E)
    if Bp != B:
        emb_tm = jnp.pad(emb_tm, ((0, 0), (0, Bp - B), (0, 0)))
    emb_flat = emb_tm.reshape(TB, E).astype(mxu_dtype)               # (T*Bp,E)

    vis_p = vis_input.astype(jnp.float32)
    if Bp != B:
        vis_p = jnp.pad(vis_p, ((0, Bp - B), (0, 0)))
    vis_p = vis_p.astype(mxu_dtype)                                  # (Bp, C)

    # --- initial state (zeros matches PyTorch init_hidden). ---
    h0 = jnp.zeros((Bp, Hp), jnp.float32)
    c0 = jnp.zeros((Bp, Hp), jnp.float32)
    if init_state is not None:
        h0_in, c0_in = init_state            # each (1, B, H)
        h0 = h0.at[:B, :H].set(h0_in[0].astype(jnp.float32))
        c0 = c0.at[:B, :H].set(c0_in[0].astype(jnp.float32))

    # --- pad / re-layout weights (zero padding -> numerically exact). ---
    w_vis_p = _pad_ate = _pad_gate_cols(w_ih[:C], H, Hp).astype(mxu_dtype)
    w_emb_p = _pad_gate_cols(w_ih[C:], H, Hp).astype(mxu_dtype)      # (E, 4Hp)
    w_hh_p = _pad_gate_cols(w_hh, H, Hp)
    w_hh_p = jnp.pad(w_hh_p, ((0, Hp - H), (0, 0))).astype(mxu_dtype)
    b_p = _pad_gate_cols(b[None, :].astype(jnp.float32), H, Hp)      # (1, 4Hp)
    fc_w_p = jnp.pad(fc_w, ((0, Hp - H), (0, Vp - V))).astype(mxu_dtype)
    fc_b_p = jnp.pad(fc_b[None, :].astype(jnp.float32),
                     ((0, 0), (0, Vp - V)))                          # (1, Vp)

    # --- VMEM budget: pipelined operands are double-buffered (x2), scratch is
    # single-buffered; add 25% headroom and never go below the 32 MiB default.
    def _nbytes(shape, dtype):
        n = 1
        for s in shape:
            n *= s
        return n * jnp.dtype(dtype).itemsize

    mxu_b = jnp.dtype(mxu_dtype).itemsize
    pipelined = (
        TB * E * mxu_b + E * 4 * Hp * mxu_b            # emb, w_emb
        + Bp * C * mxu_b + C * 4 * Hp * mxu_b          # vis, w_vis
        + 4 * Hp * 4 + Hp * 4 * Hp * mxu_b             # bias, w_hh
        + Hp * tV * mxu_b + tV * 4                     # fc_w tile, fc_b tile
        + 2 * Bp * Hp * 4                              # h0, c0
        + TB * tV * 4 + 2 * Bp * Hp * 4)               # logits tile, h/c out
    scratch = (_nbytes((TB, 4 * Hp), jnp.float32)
               + _nbytes((TB, Hp), h_all_dtype))
    vmem_limit = min(64 * 1024 * 1024,
                     max(32 * 1024 * 1024,
                         int((2 * pipelined + scratch) * 1.25)))

    grid_spec = pltpu.PrefetchScalarGridSpec(
        num_scalar_prefetch=0,
        grid=(NV,),
        in_specs=[
            pl.BlockSpec((TB, E), lambda j: (0, 0)),           # emb (time-major)
            pl.BlockSpec((E, 4 * Hp), lambda j: (0, 0)),       # w_emb
            pl.BlockSpec((Bp, C), lambda j: (0, 0)),           # vis
            pl.BlockSpec((C, 4 * Hp), lambda j: (0, 0)),       # w_vis
            pl.BlockSpec((1, 4 * Hp), lambda j: (0, 0)),       # bias
            pl.BlockSpec((Hp, 4 * Hp), lambda j: (0, 0)),      # w_hh
            pl.BlockSpec((Hp, tV), lambda j: (0, j)),          # fc_w tile
            pl.BlockSpec((1, tV), lambda j: (0, j)),           # fc_b tile
            pl.BlockSpec((Bp, Hp), lambda j: (0, 0)),          # h0
            pl.BlockSpec((Bp, Hp), lambda j: (0, 0)),          # c0
        ],
        out_specs=[
            pl.BlockSpec((TB, tV), lambda j: (0, j)),          # logits tile
            pl.BlockSpec((Bp, Hp), lambda j: (0, 0)),          # final h
            pl.BlockSpec((Bp, Hp), lambda j: (0, 0)),          # final c
        ],
        scratch_shapes=[
            pltpu.VMEM((TB, 4 * Hp), jnp.float32),             # gates_x
            pltpu.VMEM((TB, Hp), h_all_dtype),                 # h_all
        ],
    )

    logits_p, h_last_p, c_last_p = pl.pallas_call(
        _decoder_kernel,
        out_shape=(
            jax.ShapeDtypeStruct((TB, Vp), jnp.float32),
            jax.ShapeDtypeStruct((Bp, Hp), jnp.float32),
            jax.ShapeDtypeStruct((Bp, Hp), jnp.float32),
        ),
        grid_spec=grid_spec,
        compiler_params=pltpu.CompilerParams(
            dimension_semantics=("arbitrary",),   # scratch carries across V tiles
            vmem_limit_bytes=vmem_limit,
        ),
    )(emb_flat, w_emb_p, vis_p, w_vis_p, b_p, w_hh_p, fc_w_p, fc_b_p, h0, c0)

    # Un-pad + return in the PyTorch batch-first convention.  Padded batch
    # rows (driven only by the bias) are sliced away here, so the returned
    # hidden state is safe to feed back as init_state.
    fc_output = jnp.transpose(
        logits_p.reshape(T, Bp, Vp)[:, :B, :V], (1, 0, 2))    # (B, T, V)
    hidden = (h_last_p[:B, :H][None, :, :], c_last_p[:B, :H][None, :, :])
    return fc_output, hidden


def init_params(key, vocab_size, embd_dim, encoder_out_dim, lstm_dim):
    """Deterministic synthetic parameters (shapes match the PyTorch module)."""
    D = encoder_out_dim + embd_dim
    ks = jax.random.split(key, 7)
    scale = 0.1
    emb = scale * jax.random.normal(ks[0], (vocab_size, embd_dim), jnp.float32)
    # PyTorch LSTM stores weight_ih as (4H, D); we keep the transpose for x @ W
    # with gate order (i, f, g, o).
    w_ih = scale * jax.random.normal(ks[1], (D, 4 * lstm_dim), jnp.float32)
    w_hh = scale * jax.random.normal(ks[2], (lstm_dim, 4 * lstm_dim), jnp.float32)
    b_ih = scale * jax.random.normal(ks[3], (4 * lstm_dim,), jnp.float32)
    b_hh = scale * jax.random.normal(ks[4], (4 * lstm_dim,), jnp.float32)
    fc_w = scale * jax.random.normal(ks[5], (lstm_dim, vocab_size), jnp.float32)
    fc_b = scale * jax.random.normal(ks[6], (vocab_size,), jnp.float32)
    return {
        "embedding": emb,
        "w_ih": w_ih,
        "w_hh": w_hh,
        "b": b_ih + b_hh,
        "fc_w": fc_w,
        "fc_b": fc_b,
    }


def _reference_forward(params, vis_input, txt_input, init_state=None):
    """Pure-JAX reference (lax.scan LSTM) for a correctness check."""
    emb = jnp.take(params["embedding"], txt_input, axis=0)
    B, T = txt_input.shape
    H = params["w_hh"].shape[0]
    vis_rep = jnp.broadcast_to(vis_input[:, None, :],
                               (B, T, vis_input.shape[-1]))
    x = jnp.concatenate([vis_rep, emb], axis=-1).astype(jnp.float32)

    def step(carry, x_t):
        h, c = carry
        gates = x_t @ params["w_ih"] + h @ params["w_hh"] + params["b"]
        i = jax.nn.sigmoid(gates[:, 0 * H:1 * H])
        f = jax.nn.sigmoid(gates[:, 1 * H:2 * H])
        g = jnp.tanh(gates[:, 2 * H:3 * H])
        o = jax.nn.sigmoid(gates[:, 3 * H:4 * H])
        c_new = f * c + i * g
        h_new = o * jnp.tanh(c_new)
        return (h_new, c_new), h_new

    if init_state is None:
        h0 = jnp.zeros((B, H), jnp.float32)
        c0 = jnp.zeros((B, H), jnp.float32)
    else:
        h0 = init_state[0][0].astype(jnp.float32)
        c0 = init_state[1][0].astype(jnp.float32)
    (hT, cT), hs = jax.lax.scan(step, (h0, c0), jnp.transpose(x, (1, 0, 2)))
    out = jnp.transpose(hs, (1, 0, 2))
    logits = out @ params["fc_w"] + params["fc_b"]
    return logits, (hT[None], cT[None])


if __name__ == "__main__":
    # Small config consistent with the module's cfg dict.
    VOCAB_SIZE = 32
    EMBD_DIM = 16
    ENCODER_OUT_DIM = 16
    LSTM_DIM = 32
    B, T = 4, 8

    key = jax.random.PRNGKey(0)
    k_par, k_vis, k_txt, k_h0, k_c0, k_par2, k_txt2 = jax.random.split(key, 7)

    params = init_params(k_par, VOCAB_SIZE, EMBD_DIM, ENCODER_OUT_DIM, LSTM_DIM)
    vis_input = jax.random.normal(k_vis, (B, ENCODER_OUT_DIM), jnp.float32)
    txt_input = jax.random.randint(k_txt, (B, T), 0, VOCAB_SIZE, jnp.int32)

    ref_out, (ref_h, ref_c) = _reference_forward(params, vis_input, txt_input)

    # --- f32 path, zero initial state (tight tolerance) ---
    fc_out, (h, c) = decoder_forward(params, vis_input, txt_input,
                                     use_bf16=False)
    fc_out = jax.block_until_ready(fc_out)
    h = jax.block_until_ready(h)
    c = jax.block_until_ready(c)
    assert fc_out.shape == (B, T, VOCAB_SIZE)
    assert h.shape == (1, B, LSTM_DIM) and c.shape == (1, B, LSTM_DIM)
    assert jnp.allclose(fc_out, ref_out, atol=1e-4, rtol=1e-4)
    assert jnp.allclose(h, ref_h, atol=1e-4, rtol=1e-4)
    assert jnp.allclose(c, ref_c, atol=1e-4, rtol=1e-4)

    # --- f32 path with a provided init_state ---
    h0 = 0.1 * jax.random.normal(k_h0, (1, B, LSTM_DIM), jnp.float32)
    c0 = 0.1 * jax.random.normal(k_c0, (1, B, LSTM_DIM), jnp.float32)
    fc_out2, (h2, c2) = decoder_forward(params, vis_input, txt_input,
                                        init_state=(h0, c0), use_bf16=False)
    fc_out2 = jax.block_until_ready(fc_out2)
    ref_out2, (ref_h2, ref_c2) = _reference_forward(
        params, vis_input, txt_input, init_state=(h0, c0))
    assert jnp.allclose(fc_out2, ref_out2, atol=1e-4, rtol=1e-4)
    assert jnp.allclose(h2, ref_h2, atol=1e-4, rtol=1e-4)
    assert jnp.allclose(c2, ref_c2, atol=1e-4, rtol=1e-4)

    # --- default path: bf16 MXU operands (v6e/v7x recommendation);
    #     looser tolerance (bf16 h cast compounds over T). ---
    fc_out_bf, (h_bf, c_bf) = decoder_forward(params, vis_input, txt_input)
    fc_out_bf = jax.block_until_ready(fc_out_bf)
    assert bool(jnp.all(jnp.isfinite(fc_out_bf)))
    assert jnp.allclose(fc_out_bf, ref_out, atol=1e-1, rtol=1e-1)
    assert jnp.allclose(h_bf, ref_h, atol=1e-1, rtol=1e-1)
    assert jnp.allclose(c_bf, ref_c, atol=1e-1, rtol=1e-1)

    # --- multi-V-tile path (vocab > tile): exercises the pl.when phase guard
    #     and scratch persistence across grid steps; f32 + tight tolerance. ---
    VOCAB2 = 200
    params2 = init_params(k_par2, VOCAB2, EMBD_DIM, ENCODER_OUT_DIM, LSTM_DIM)
    txt_input2 = jax.random.randint(k_txt2, (B, T), 0, VOCAB2, jnp.int32)
    fc_out3, (h3, c3) = decoder_forward(params2, vis_input, txt_input2,
                                        use_bf16=False, v_tile=128)
    fc_out3 = jax.block_until_ready(fc_out3)
    ref_out3, (ref_h3, ref_c3) = _reference_forward(params2, vis_input,
                                                    txt_input2)
    assert fc_out3.shape == (B, T, VOCAB2)
    assert jnp.allclose(fc_out3, ref_out3, atol=1e-4, rtol=1e-4)
    assert jnp.allclose(h3, ref_h3, atol=1e-4, rtol=1e-4)
    assert jnp.allclose(c3, ref_c3, atol=1e-4, rtol=1e-4)

    print("KERNEL_OK")
</pallas_src>

<mosaic_0001>
module attributes {stable_mosaic.version = 11 : i64} {
  func.func @_decoder_kernel(%arg0: i32, %arg1: memref<64x16xf32, #tpu.memory_space<vmem>>, %arg2: memref<16x512xf32, #tpu.memory_space<vmem>>, %arg3: memref<8x16xf32, #tpu.memory_space<vmem>>, %arg4: memref<16x512xf32, #tpu.memory_space<vmem>>, %arg5: memref<1x512xf32, #tpu.memory_space<vmem>>, %arg6: memref<128x512xf32, #tpu.memory_space<vmem>>, %arg7: memref<128x128xf32, #tpu.memory_space<vmem>>, %arg8: memref<1x128xf32, #tpu.memory_space<vmem>>, %arg9: memref<8x128xf32, #tpu.memory_space<vmem>>, %arg10: memref<8x128xf32, #tpu.memory_space<vmem>>, %arg11: memref<64x128xf32, #tpu.memory_space<vmem>>, %arg12: memref<8x128xf32, #tpu.memory_space<vmem>>, %arg13: memref<8x128xf32, #tpu.memory_space<vmem>>, %arg14: memref<64x512xf32, #tpu.memory_space<vmem>>, %arg15: memref<64x128xf32, #tpu.memory_space<vmem>>) attributes {dimension_semantics = [#tpu.dimension_semantics<arbitrary>], iteration_bounds = array<i64: 1>, scalar_prefetch = 0 : i64, scratch_operands = 2 : i64, tpu.core_type = #tpu.core_type<tc>, window_params = [{pipeline_mode = #tpu.pipeline_mode<synchronous>, transform_indices = @transform_0, window_bounds = array<i64: 64, 16>}, {pipeline_mode = #tpu.pipeline_mode<synchronous>, transform_indices = @transform_1, window_bounds = array<i64: 16, 512>}, {pipeline_mode = #tpu.pipeline_mode<synchronous>, transform_indices = @transform_2, window_bounds = array<i64: 8, 16>}, {pipeline_mode = #tpu.pipeline_mode<synchronous>, transform_indices = @transform_3, window_bounds = array<i64: 16, 512>}, {pipeline_mode = #tpu.pipeline_mode<synchronous>, transform_indices = @transform_4, window_bounds = array<i64: 1, 512>}, {pipeline_mode = #tpu.pipeline_mode<synchronous>, transform_indices = @transform_5, window_bounds = array<i64: 128, 512>}, {transform_indices = @transform_6, window_bounds = array<i64: 128, 128>}, {transform_indices = @transform_7, window_bounds = array<i64: 1, 128>}, {pipeline_mode = #tpu.pipeline_mode<synchronous>, transform_indices = @transform_8, window_bounds = array<i64: 8, 128>}, {pipeline_mode = #tpu.pipeline_mode<synchronous>, transform_indices = @transform_9, window_bounds = array<i64: 8, 128>}, {transform_indices = @transform_10, window_bounds = array<i64: 64, 128>}, {pipeline_mode = #tpu.pipeline_mode<synchronous>, transform_indices = @transform_11, window_bounds = array<i64: 8, 128>}, {pipeline_mode = #tpu.pipeline_mode<synchronous>, transform_indices = @transform_12, window_bounds = array<i64: 8, 128>}]} {
    %c0_i32 = arith.constant 0 : i32
    %0 = arith.cmpi eq, %arg0, %c0_i32 : i32
    %1 = arith.extui %0 : i1 to i32
    %c0_i32_0 = arith.constant 0 : i32
    %2 = arith.cmpi ne, %1, %c0_i32_0 : i32
    scf.if %2 {
      %c0_8 = arith.constant 0 : index
      %c0_9 = arith.constant 0 : index
      %10 = vector.load %arg1[%c0_8, %c0_9] : memref<64x16xf32, #tpu.memory_space<vmem>>, vector<64x16xf32>
      %c0_10 = arith.constant 0 : index
      %c0_11 = arith.constant 0 : index
      %11 = vector.load %arg2[%c0_10, %c0_11] : memref<16x512xf32, #tpu.memory_space<vmem>>, vector<16x512xf32>
      %cst_12 = arith.constant dense<0.000000e+00> : vector<64x512xf32>
      %12 = tpu.matmul %10, %11, %cst_12 {dimension_numbers = #tpu.dot_dimension_numbers<[1], [0], [0], [1], [0, 0, 1, 1], [], []>} : vector<64x16xf32>, vector<16x512xf32>, vector<64x512xf32> -> vector<64x512xf32>
      %c0_13 = arith.constant 0 : index
      %c0_14 = arith.constant 0 : index
      %13 = vector.load %arg14[%c0_13, %c0_14] : memref<64x512xf32, #tpu.memory_space<vmem>>, vector<64x512xf32>
      tpu.vector_store %arg14[%c0_13, %c0_14], %12 {strides = array<i32>} : memref<64x512xf32, #tpu.memory_space<vmem>>, vector<64x512xf32>,
      %c0_15 = arith.constant 0 : index
      %c0_16 = arith.constant 0 : index
      %14 = vector.load %arg3[%c0_15, %c0_16] : memref<8x16xf32, #tpu.memory_space<vmem>>, vector<8x16xf32>
      %c0_17 = arith.constant 0 : index
      %c0_18 = arith.constant 0 : index
      %15 = vector.load %arg4[%c0_17, %c0_18] : memref<16x512xf32, #tpu.memory_space<vmem>>, vector<16x512xf32>
      %cst_19 = arith.constant dense<0.000000e+00> : vector<8x512xf32>
      %16 = tpu.matmul %14, %15, %cst_19 {dimension_numbers = #tpu.dot_dimension_numbers<[1], [0], [0], [1], [0, 0, 1, 1], [], []>} : vector<8x16xf32>, vector<16x512xf32>, vector<8x512xf32> -> vector<8x512xf32>
      %c0_20 = arith.constant 0 : index
      %c0_21 = arith.constant 0 : index
      %17 = vector.load %arg5[%c0_20, %c0_21] : memref<1x512xf32, #tpu.memory_space<vmem>>, vector<1x512xf32>
      %18 = vector.broadcast %17 : vector<1x512xf32> to vector<8x512xf32>
      %19 = arith.addf %16, %18 : vector<8x512xf32>
      %c0_22 = arith.constant 0 : index
      %c0_23 = arith.constant 0 : index
      %20 = vector.load %arg6[%c0_22, %c0_23] : memref<128x512xf32, #tpu.memory_space<vmem>>, vector<128x512xf32>
      %c0_24 = arith.constant 0 : index
      %c0_25 = arith.constant 0 : index
      %21 = vector.load %arg9[%c0_24, %c0_25] : memref<8x128xf32, #tpu.memory_space<vmem>>, vector<8x128xf32>
      %c0_26 = arith.constant 0 : index
      %c0_27 = arith.constant 0 : index
      %22 = vector.load %arg10[%c0_26, %c0_27] : memref<8x128xf32, #tpu.memory_space<vmem>>, vector<8x128xf32>
      %c0_i32_28 = arith.constant 0 : i32
      %c8_i32 = arith.constant 8 : i32
      %23 = arith.muli %c0_i32_28, %c8_i32 : i32
      %24 = tpu.assume_multiple %23, 8 : i32
      %25 = arith.index_cast %24 : i32 to index
      %c0_29 = arith.constant 0 : index
      %26 = vector.load %arg14[%25, %c0_29] : memref<64x512xf32, #tpu.memory_space<vmem>>, vector<8x512xf32>
      %27 = arith.addf %26, %19 : vector<8x512xf32>
      %cst_30 = arith.constant dense<0.000000e+00> : vector<8x512xf32>
      %28 = tpu.matmul %21, %20, %cst_30 {dimension_numbers = #tpu.dot_dimension_numbers<[1], [0], [0], [1], [0, 0, 1, 1], [], []>} : vector<8x128xf32>, vector<128x512xf32>, vector<8x512xf32> -> vector<8x512xf32>
      %29 = arith.addf %27, %28 : vector<8x512xf32>
      %30 = vector.extract_strided_slice %29 {offsets = [0, 0], sizes = [8, 128], strides = [1, 1]} : vector<8x512xf32> to vector<8x128xf32>
      %31 = arith.negf %30 : vector<8x128xf32>
      %32 = math.exp %31 : vector<8x128xf32>
      %cst_31 = arith.constant 1.000000e+00 : f32
      %33 = vector.broadcast %cst_31 : f32 to vector<8x128xf32>
      %34 = arith.addf %33, %32 : vector<8x128xf32>
      %35 = arith.divf %33, %34 : vector<8x128xf32>
      %36 = vector.extract_strided_slice %29 {offsets = [0, 128], sizes = [8, 128], strides = [1, 1]} : vector<8x512xf32> to vector<8x128xf32>
      %37 = arith.negf %36 : vector<8x128xf32>
      %38 = math.exp %37 : vector<8x128xf32>
      %cst_32 = arith.constant 1.000000e+00 : f32
      %39 = vector.broadcast %cst_32 : f32 to vector<8x128xf32>
      %40 = arith.addf %39, %38 : vector<8x128xf32>
      %41 = arith.divf %39, %40 : vector<8x128xf32>
      %42 = vector.extract_strided_slice %29 {offsets = [0, 256], sizes = [8, 128], strides = [1, 1]} : vector<8x512xf32> to vector<8x128xf32>
      %43 = math.tanh %42 : vector<8x128xf32>
      %44 = vector.extract_strided_slice %29 {offsets = [0, 384], sizes = [8, 128], strides = [1, 1]} : vector<8x512xf32> to vector<8x128xf32>
      %45 = arith.negf %44 : vector<8x128xf32>
      %46 = math.exp %45 : vector<8x128xf32>
      %cst_33 = arith.constant 1.000000e+00 : f32
      %47 = vector.broadcast %cst_33 : f32 to vector<8x128xf32>
      %48 = arith.addf %47, %46 : vector<8x128xf32>
      %49 = arith.divf %47, %48 : vector<8x128xf32>
      %50 = arith.mulf %41, %22 : vector<8x128xf32>
      %51 = arith.mulf %35, %43 : vector<8x128xf32>
      %52 = arith.addf %50, %51 : vector<8x128xf32>
      %53 = math.tanh %52 : vector<8x128xf32>
      %54 = arith.mulf %49, %53 : vector<8x128xf32>
      %55 = arith.index_cast %24 : i32 to index
      %c0_34 = arith.constant 0 : index
      %56 = vector.load %arg15[%55, %c0_34] : memref<64x128xf32, #tpu.memory_space<vmem>>, vector<8x128xf32>
      tpu.vector_store %arg15[%55, %c0_34], %54 {strides = array<i32>} : memref<64x128xf32, #tpu.memory_space<vmem>>, vector<8x128xf32>,
      %c1_i32 = arith.constant 1 : i32
      %c8_i32_35 = arith.constant 8 : i32
      %57 = arith.muli %c1_i32, %c8_i32_35 : i32
      %58 = tpu.assume_multiple %57, 8 : i32
      %59 = arith.index_cast %58 : i32 to index
      %c0_36 = arith.constant 0 : index
      %60 = vector.load %arg14[%59, %c0_36] : memref<64x512xf32, #tpu.memory_space<vmem>>, vector<8x512xf32>
      %61 = arith.addf %60, %19 : vector<8x512xf32>
      %cst_37 = arith.constant dense<0.000000e+00> : vector<8x512xf32>
      %62 = tpu.matmul %54, %20, %cst_37 {dimension_numbers = #tpu.dot_dimension_numbers<[1], [0], [0], [1], [0, 0, 1, 1], [], []>} : vector<8x128xf32>, vector<128x512xf32>, vector<8x512xf32> -> vector<8x512xf32>
      %63 = arith.addf %61, %62 : vector<8x512xf32>
      %64 = vector.extract_strided_slice %63 {offsets = [0, 0], sizes = [8, 128], strides = [1, 1]} : vector<8x512xf32> to vector<8x128xf32>
      %65 = arith.negf %64 : vector<8x128xf32>
      %66 = math.exp %65 : vector<8x128xf32>
      %cst_38 = arith.constant 1.000000e+00 : f32
      %67 = vector.broadcast %cst_38 : f32 to vector<8x128xf32>
      %68 = arith.addf %67, %66 : vector<8x128xf32>
      %69 = arith.divf %67, %68 : vector<8x128xf32>
      %70 = vector.extract_strided_slice %63 {offsets = [0, 128], sizes = [8, 128], strides = [1, 1]} : vector<8x512xf32> to vector<8x128xf32>
      %71 = arith.negf %70 : vector<8x128xf32>
      %72 = math.exp %71 : vector<8x128xf32>
      %cst_39 = arith.constant 1.000000e+00 : f32
      %73 = vector.broadcast %cst_39 : f32 to vector<8x128xf32>
      %74 = arith.addf %73, %72 : vector<8x128xf32>
      %75 = arith.divf %73, %74 : vector<8x128xf32>
      %76 = vector.extract_strided_slice %63 {offsets = [0, 256], sizes = [8, 128], strides = [1, 1]} : vector<8x512xf32> to vector<8x128xf32>
      %77 = math.tanh %76 : vector<8x128xf32>
      %78 = vector.extract_strided_slice %63 {offsets = [0, 384], sizes = [8, 128], strides = [1, 1]} : vector<8x512xf32> to vector<8x128xf32>
      %79 = arith.negf %78 : vector<8x128xf32>
      %80 = math.exp %79 : vector<8x128xf32>
      %cst_40 = arith.constant 1.000000e+00 : f32
      %81 = vector.broadcast %cst_40 : f32 to vector<8x128xf32>
      %82 = arith.addf %81, %80 : vector<8x128xf32>
      %83 = arith.divf %81, %82 : vector<8x128xf32>
      %84 = arith.mulf %75, %52 : vector<8x128xf32>
      %85 = arith.mulf %69, %77 : vector<8x128xf32>
      %86 = arith.addf %84, %85 : vector<8x128xf32>
      %87 = math.tanh %86 : vector<8x128xf32>
      %88 = arith.mulf %83, %87 : vector<8x128xf32>
      %89 = arith.index_cast %58 : i32 to index
      %c0_41 = arith.constant 0 : index
      %90 = vector.load %arg15[%89, %c0_41] : memref<64x128xf32, #tpu.memory_space<vmem>>, vector<8x128xf32>
      tpu.vector_store %arg15[%89, %c0_41], %88 {strides = array<i32>} : memref<64x128xf32, #tpu.memory_space<vmem>>, vector<8x128xf32>,
      %c2_i32 = arith.constant 2 : i32
      %c8_i32_42 = arith.constant 8 : i32
      %91 = arith.muli %c2_i32, %c8_i32_42 : i32
      %92 = tpu.assume_multiple %91, 8 : i32
      %93 = arith.index_cast %92 : i32 to index
      %c0_43 = arith.constant 0 : index
      %94 = vector.load %arg14[%93, %c0_43] : memref<64x512xf32, #tpu.memory_space<vmem>>, vector<8x512xf32>
      %95 = arith.addf %94, %19 : vector<8x512xf32>
      %cst_44 = arith.constant dense<0.000000e+00> : vector<8x512xf32>
      %96 = tpu.matmul %88, %20, %cst_44 {dimension_numbers = #tpu.dot_dimension_numbers<[1], [0], [0], [1], [0, 0, 1, 1], [], []>} : vector<8x128xf32>, vector<128x512xf32>, vector<8x512xf32> -> vector<8x512xf32>
      %97 = arith.addf %95, %96 : vector<8x512xf32>
      %98 = vector.extract_strided_slice %97 {offsets = [0, 0], sizes = [8, 128], strides = [1, 1]} : vector<8x512xf32> to vector<8x128xf32>
      %99 = arith.negf %98 : vector<8x128xf32>
      %100 = math.exp %99 : vector<8x128xf32>
      %cst_45 = arith.constant 1.000000e+00 : f32
      %101 = vector.broadcast %cst_45 : f32 to vector<8x128xf32>
      %102 = arith.addf %101, %100 : vector<8x128xf32>
      %103 = arith.divf %101, %102 : vector<8x128xf32>
      %104 = vector.extract_strided_slice %97 {offsets = [0, 128], sizes = [8, 128], strides = [1, 1]} : vector<8x512xf32> to vector<8x128xf32>
      %105 = arith.negf %104 : vector<8x128xf32>
      %106 = math.exp %105 : vector<8x128xf32>
      %cst_46 = arith.constant 1.000000e+00 : f32
      %107 = vector.broadcast %cst_46 : f32 to vector<8x128xf32>
      %108 = arith.addf %107, %106 : vector<8x128xf32>
      %109 = arith.divf %107, %108 : vector<8x128xf32>
      %110 = vector.extract_strided_slice %97 {offsets = [0, 256], sizes = [8, 128], strides = [1, 1]} : vector<8x512xf32> to vector<8x128xf32>
      %111 = math.tanh %110 : vector<8x128xf32>
      %112 = vector.extract_strided_slice %97 {offsets = [0, 384], sizes = [8, 128], strides = [1, 1]} : vector<8x512xf32> to vector<8x128xf32>
      %113 = arith.negf %112 : vector<8x128xf32>
      %114 = math.exp %113 : vector<8x128xf32>
      %cst_47 = arith.constant 1.000000e+00 : f32
      %115 = vector.broadcast %cst_47 : f32 to vector<8x128xf32>
      %116 = arith.addf %115, %114 : vector<8x128xf32>
      %117 = arith.divf %115, %116 : vector<8x128xf32>
      %118 = arith.mulf %109, %86 : vector<8x128xf32>
      %119 = arith.mulf %103, %111 : vector<8x128xf32>
      %120 = arith.addf %118, %119 : vector<8x128xf32>
      %121 = math.tanh %120 : vector<8x128xf32>
      %122 = arith.mulf %117, %121 : vector<8x128xf32>
      %123 = arith.index_cast %92 : i32 to index
      %c0_48 = arith.constant 0 : index
      %124 = vector.load %arg15[%123, %c0_48] : memref<64x128xf32, #tpu.memory_space<vmem>>, vector<8x128xf32>
      tpu.vector_store %arg15[%123, %c0_48], %122 {strides = array<i32>} : memref<64x128xf32, #tpu.memory_space<vmem>>, vector<8x128xf32>,
      %c3_i32 = arith.constant 3 : i32
      %c8_i32_49 = arith.constant 8 : i32
      %125 = arith.muli %c3_i32, %c8_i32_49 : i32
      %126 = tpu.assume_multiple %125, 8 : i32
      %127 = arith.index_cast %126 : i32 to index
      %c0_50 = arith.constant 0 : index
      %128 = vector.load %arg14[%127, %c0_50] : memref<64x512xf32, #tpu.memory_space<vmem>>, vector<8x512xf32>
      %129 = arith.addf %128, %19 : vector<8x512xf32>
      %cst_51 = arith.constant dense<0.000000e+00> : vector<8x512xf32>
      %130 = tpu.matmul %122, %20, %cst_51 {dimension_numbers = #tpu.dot_dimension_numbers<[1], [0], [0], [1], [0, 0, 1, 1], [], []>} : vector<8x128xf32>, vector<128x512xf32>, vector<8x512xf32> -> vector<8x512xf32>
      %131 = arith.addf %129, %130 : vector<8x512xf32>
      %132 = vector.extract_strided_slice %131 {offsets = [0, 0], sizes = [8, 128], strides = [1, 1]} : vector<8x512xf32> to vector<8x128xf32>
      %133 = arith.negf %132 : vector<8x128xf32>
      %134 = math.exp %133 : vector<8x128xf32>
      %cst_52 = arith.constant 1.000000e+00 : f32
      %135 = vector.broadcast %cst_52 : f32 to vector<8x128xf32>
      %136 = arith.addf %135, %134 : vector<8x128xf32>
      %137 = arith.divf %135, %136 : vector<8x128xf32>
      %138 = vector.extract_strided_slice %131 {offsets = [0, 128], sizes = [8, 128], strides = [1, 1]} : vector<8x512xf32> to vector<8x128xf32>
      %139 = arith.negf %138 : vector<8x128xf32>
      %140 = math.exp %139 : vector<8x128xf32>
      %cst_53 = arith.constant 1.000000e+00 : f32
      %141 = vector.broadcast %cst_53 : f32 to vector<8x128xf32>
      %142 = arith.addf %141, %140 : vector<8x128xf32>
      %143 = arith.divf %141, %142 : vector<8x128xf32>
      %144 = vector.extract_strided_slice %131 {offsets = [0, 256], sizes = [8, 128], strides = [1, 1]} : vector<8x512xf32> to vector<8x128xf32>
      %145 = math.tanh %144 : vector<8x128xf32>
      %146 = vector.extract_strided_slice %131 {offsets = [0, 384], sizes = [8, 128], strides = [1, 1]} : vector<8x512xf32> to vector<8x128xf32>
      %147 = arith.negf %146 : vector<8x128xf32>
      %148 = math.exp %147 : vector<8x128xf32>
      %cst_54 = arith.constant 1.000000e+00 : f32
      %149 = vector.broadcast %cst_54 : f32 to vector<8x128xf32>
      %150 = arith.addf %149, %148 : vector<8x128xf32>
      %151 = arith.divf %149, %150 : vector<8x128xf32>
      %152 = arith.mulf %143, %120 : vector<8x128xf32>
      %153 = arith.mulf %137, %145 : vector<8x128xf32>
      %154 = arith.addf %152, %153 : vector<8x128xf32>
      %155 = math.tanh %154 : vector<8x128xf32>
      %156 = arith.mulf %151, %155 : vector<8x128xf32>
      %157 = arith.index_cast %126 : i32 to index
      %c0_55 = arith.constant 0 : index
      %158 = vector.load %arg15[%157, %c0_55] : memref<64x128xf32, #tpu.memory_space<vmem>>, vector<8x128xf32>
      tpu.vector_store %arg15[%157, %c0_55], %156 {strides = array<i32>} : memref<64x128xf32, #tpu.memory_space<vmem>>, vector<8x128xf32>,
      %c4_i32 = arith.constant 4 : i32
      %c8_i32_56 = arith.constant 8 : i32
      %159 = arith.muli %c4_i32, %c8_i32_56 : i32
      %160 = tpu.assume_multiple %159, 8 : i32
      %161 = arith.index_cast %160 : i32 to index
      %c0_57 = arith.constant 0 : index
      %162 = vector.load %arg14[%161, %c0_57] : memref<64x512xf32, #tpu.memory_space<vmem>>, vector<8x512xf32>
      %163 = arith.addf %162, %19 : vector<8x512xf32>
      %cst_58 = arith.constant dense<0.000000e+00> : vector<8x512xf32>
      %164 = tpu.matmul %156, %20, %cst_58 {dimension_numbers = #tpu.dot_dimension_numbers<[1], [0], [0], [1], [0, 0, 1, 1], [], []>} : vector<8x128xf32>, vector<128x512xf32>, vector<8x512xf32> -> vector<8x512xf32>
      %165 = arith.addf %163, %164 : vector<8x512xf32>
      %166 = vector.extract_strided_slice %165 {offsets = [0, 0], sizes = [8, 128], strides = [1, 1]} : vector<8x512xf32> to vector<8x128xf32>
      %167 = arith.negf %166 : vector<8x128xf32>
      %168 = math.exp %167 : vector<8x128xf32>
      %cst_59 = arith.constant 1.000000e+00 : f32
      %169 = vector.broadcast %cst_59 : f32 to vector<8x128xf32>
      %170 = arith.addf %169, %168 : vector<8x128xf32>
      %171 = arith.divf %169, %170 : vector<8x128xf32>
      %172 = vector.extract_strided_slice %165 {offsets = [0, 128], sizes = [8, 128], strides = [1, 1]} : vector<8x512xf32> to vector<8x128xf32>
      %173 = arith.negf %172 : vector<8x128xf32>
      %174 = math.exp %173 : vector<8x128xf32>
      %cst_60 = arith.constant 1.000000e+00 : f32
      %175 = vector.broadcast %cst_60 : f32 to vector<8x128xf32>
      %176 = arith.addf %175, %174 : vector<8x128xf32>
      %177 = arith.divf %175, %176 : vector<8x128xf32>
      %178 = vector.extract_strided_slice %165 {offsets = [0, 256], sizes = [8, 128], strides = [1, 1]} : vector<8x512xf32> to vector<8x128xf32>
      %179 = math.tanh %178 : vector<8x128xf32>
      %180 = vector.extract_strided_slice %165 {offsets = [0, 384], sizes = [8, 128], strides = [1, 1]} : vector<8x512xf32> to vector<8x128xf32>
      %181 = arith.negf %180 : vector<8x128xf32>
      %182 = math.exp %181 : vector<8x128xf32>
      %cst_61 = arith.constant 1.000000e+00 : f32
      %183 = vector.broadcast %cst_61 : f32 to vector<8x128xf32>
      %184 = arith.addf %183, %182 : vector<8x128xf32>
      %185 = arith.divf %183, %184 : vector<8x128xf32>
      %186 = arith.mulf %177, %154 : vector<8x128xf32>
      %187 = arith.mulf %171, %179 : vector<8x128xf32>
      %188 = arith.addf %186, %187 : vector<8x128xf32>
      %189 = math.tanh %188 : vector<8x128xf32>
      %190 = arith.mulf %185, %189 : vector<8x128xf32>
      %191 = arith.index_cast %160 : i32 to index
      %c0_62 = arith.constant 0 : index
      %192 = vector.load %arg15[%191, %c0_62] : memref<64x128xf32, #tpu.memory_space<vmem>>, vector<8x128xf32>
      tpu.vector_store %arg15[%191, %c0_62], %190 {strides = array<i32>} : memref<64x128xf32, #tpu.memory_space<vmem>>, vector<8x128xf32>,
      %c5_i32 = arith.constant 5 : i32
      %c8_i32_63 = arith.constant 8 : i32
      %193 = arith.muli %c5_i32, %c8_i32_63 : i32
      %194 = tpu.assume_multiple %193, 8 : i32
      %195 = arith.index_cast %194 : i32 to index
      %c0_64 = arith.constant 0 : index
      %196 = vector.load %arg14[%195, %c0_64] : memref<64x512xf32, #tpu.memory_space<vmem>>, vector<8x512xf32>
      %197 = arith.addf %196, %19 : vector<8x512xf32>
      %cst_65 = arith.constant dense<0.000000e+00> : vector<8x512xf32>
      %198 = tpu.matmul %190, %20, %cst_65 {dimension_numbers = #tpu.dot_dimension_numbers<[1], [0], [0], [1], [0, 0, 1, 1], [], []>} : vector<8x128xf32>, vector<128x512xf32>, vector<8x512xf32> -> vector<8x512xf32>
      %199 = arith.addf %197, %198 : vector<8x512xf32>
      %200 = vector.extract_strided_slice %199 {offsets = [0, 0], sizes = [8, 128], strides = [1, 1]} : vector<8x512xf32> to vector<8x128xf32>
      %201 = arith.negf %200 : vector<8x128xf32>
      %202 = math.exp %201 : vector<8x128xf32>
      %cst_66 = arith.constant 1.000000e+00 : f32
      %203 = vector.broadcast %cst_66 : f32 to vector<8x128xf32>
      %204 = arith.addf %203, %202 : vector<8x128xf32>
      %205 = arith.divf %203, %204 : vector<8x128xf32>
      %206 = vector.extract_strided_slice %199 {offsets = [0, 128], sizes = [8, 128], strides = [1, 1]} : vector<8x512xf32> to vector<8x128xf32>
      %207 = arith.negf %206 : vector<8x128xf32>
      %208 = math.exp %207 : vector<8x128xf32>
      %cst_67 = arith.constant 1.000000e+00 : f32
      %209 = vector.broadcast %cst_67 : f32 to vector<8x128xf32>
      %210 = arith.addf %209, %208 : vector<8x128xf32>
      %211 = arith.divf %209, %210 : vector<8x128xf32>
      %212 = vector.extract_strided_slice %199 {offsets = [0, 256], sizes = [8, 128], strides = [1, 1]} : vector<8x512xf32> to vector<8x128xf32>
      %213 = math.tanh %212 : vector<8x128xf32>
      %214 = vector.extract_strided_slice %199 {offsets = [0, 384], sizes = [8, 128], strides = [1, 1]} : vector<8x512xf32> to vector<8x128xf32>
      %215 = arith.negf %214 : vector<8x128xf32>
      %216 = math.exp %215 : vector<8x128xf32>
      %cst_68 = arith.constant 1.000000e+00 : f32
      %217 = vector.broadcast %cst_68 : f32 to vector<8x128xf32>
      %218 = arith.addf %217, %216 : vector<8x128xf32>
      %219 = arith.divf %217, %218 : vector<8x128xf32>
      %220 = arith.mulf %211, %188 : vector<8x128xf32>
      %221 = arith.mulf %205, %213 : vector<8x128xf32>
      %222 = arith.addf %220, %221 : vector<8x128xf32>
      %223 = math.tanh %222 : vector<8x128xf32>
      %224 = arith.mulf %219, %223 : vector<8x128xf32>
      %225 = arith.index_cast %194 : i32 to index
      %c0_69 = arith.constant 0 : index
      %226 = vector.load %arg15[%225, %c0_69] : memref<64x128xf32, #tpu.memory_space<vmem>>, vector<8x128xf32>
      tpu.vector_store %arg15[%225, %c0_69], %224 {strides = array<i32>} : memref<64x128xf32, #tpu.memory_space<vmem>>, vector<8x128xf32>,
      %c6_i32 = arith.constant 6 : i32
      %c8_i32_70 = arith.constant 8 : i32
      %227 = arith.muli %c6_i32, %c8_i32_70 : i32
      %228 = tpu.assume_multiple %227, 8 : i32
      %229 = arith.index_cast %228 : i32 to index
      %c0_71 = arith.constant 0 : index
      %230 = vector.load %arg14[%229, %c0_71] : memref<64x512xf32, #tpu.memory_space<vmem>>, vector<8x512xf32>
      %231 = arith.addf %230, %19 : vector<8x512xf32>
      %cst_72 = arith.constant dense<0.000000e+00> : vector<8x512xf32>
      %232 = tpu.matmul %224, %20, %cst_72 {dimension_numbers = #tpu.dot_dimension_numbers<[1], [0], [0], [1], [0, 0, 1, 1], [], []>} : vector<8x128xf32>, vector<128x512xf32>, vector<8x512xf32> -> vector<8x512xf32>
      %233 = arith.addf %231, %232 : vector<8x512xf32>
      %234 = vector.extract_strided_slice %233 {offsets = [0, 0], sizes = [8, 128], strides = [1, 1]} : vector<8x512xf32> to vector<8x128xf32>
      %235 = arith.negf %234 : vector<8x128xf32>
      %236 = math.exp %235 : vector<8x128xf32>
      %cst_73 = arith.constant 1.000000e+00 : f32
      %237 = vector.broadcast %cst_73 : f32 to vector<8x128xf32>
      %238 = arith.addf %237, %236 : vector<8x128xf32>
      %239 = arith.divf %237, %238 : vector<8x128xf32>
      %240 = vector.extract_strided_slice %233 {offsets = [0, 128], sizes = [8, 128], strides = [1, 1]} : vector<8x512xf32> to vector<8x128xf32>
      %241 = arith.negf %240 : vector<8x128xf32>
      %242 = math.exp %241 : vector<8x128xf32>
      %cst_74 = arith.constant 1.000000e+00 : f32
      %243 = vector.broadcast %cst_74 : f32 to vector<8x128xf32>
      %244 = arith.addf %243, %242 : vector<8x128xf32>
      %245 = arith.divf %243, %244 : vector<8x128xf32>
      %246 = vector.extract_strided_slice %233 {offsets = [0, 256], sizes = [8, 128], strides = [1, 1]} : vector<8x512xf32> to vector<8x128xf32>
      %247 = math.tanh %246 : vector<8x128xf32>
      %248 = vector.extract_strided_slice %233 {offsets = [0, 384], sizes = [8, 128], strides = [1, 1]} : vector<8x512xf32> to vector<8x128xf32>
      %249 = arith.negf %248 : vector<8x128xf32>
      %250 = math.exp %249 : vector<8x128xf32>
      %cst_75 = arith.constant 1.000000e+00 : f32
      %251 = vector.broadcast %cst_75 : f32 to vector<8x128xf32>
      %252 = arith.addf %251, %250 : vector<8x128xf32>
      %253 = arith.divf %251, %252 : vector<8x128xf32>
      %254 = arith.mulf %245, %222 : vector<8x128xf32>
      %255 = arith.mulf %239, %247 : vector<8x128xf32>
      %256 = arith.addf %254, %255 : vector<8x128xf32>
      %257 = math.tanh %256 : vector<8x128xf32>
      %258 = arith.mulf %253, %257 : vector<8x128xf32>
      %259 = arith.index_cast %228 : i32 to index
      %c0_76 = arith.constant 0 : index
      %260 = vector.load %arg15[%259, %c0_76] : memref<64x128xf32, #tpu.memory_space<vmem>>, vector<8x128xf32>
      tpu.vector_store %arg15[%259, %c0_76], %258 {strides = array<i32>} : memref<64x128xf32, #tpu.memory_space<vmem>>, vector<8x128xf32>,
      %c7_i32 = arith.constant 7 : i32
      %c8_i32_77 = arith.constant 8 : i32
      %261 = arith.muli %c7_i32, %c8_i32_77 : i32
      %262 = tpu.assume_multiple %261, 8 : i32
      %263 = arith.index_cast %262 : i32 to index
      %c0_78 = arith.constant 0 : index
      %264 = vector.load %arg14[%263, %c0_78] : memref<64x512xf32, #tpu.memory_space<vmem>>, vector<8x512xf32>
      %265 = arith.addf %264, %19 : vector<8x512xf32>
      %cst_79 = arith.constant dense<0.000000e+00> : vector<8x512xf32>
      %266 = tpu.matmul %258, %20, %cst_79 {dimension_numbers = #tpu.dot_dimension_numbers<[1], [0], [0], [1], [0, 0, 1, 1], [], []>} : vector<8x128xf32>, vector<128x512xf32>, vector<8x512xf32> -> vector<8x512xf32>
      %267 = arith.addf %265, %266 : vector<8x512xf32>
      %268 = vector.extract_strided_slice %267 {offsets = [0, 0], sizes = [8, 128], strides = [1, 1]} : vector<8x512xf32> to vector<8x128xf32>
      %269 = arith.negf %268 : vector<8x128xf32>
      %270 = math.exp %269 : vector<8x128xf32>
      %cst_80 = arith.constant 1.000000e+00 : f32
      %271 = vector.broadcast %cst_80 : f32 to vector<8x128xf32>
      %272 = arith.addf %271, %270 : vector<8x128xf32>
      %273 = arith.divf %271, %272 : vector<8x128xf32>
      %274 = vector.extract_strided_slice %267 {offsets = [0, 128], sizes = [8, 128], strides = [1, 1]} : vector<8x512xf32> to vector<8x128xf32>
      %275 = arith.negf %274 : vector<8x128xf32>
      %276 = math.exp %275 : vector<8x128xf32>
      %cst_81 = arith.constant 1.000000e+00 : f32
      %277 = vector.broadcast %cst_81 : f32 to vector<8x128xf32>
      %278 = arith.addf %277, %276 : vector<8x128xf32>
      %279 = arith.divf %277, %278 : vector<8x128xf32>
      %280 = vector.extract_strided_slice %267 {offsets = [0, 256], sizes = [8, 128], strides = [1, 1]} : vector<8x512xf32> to vector<8x128xf32>
      %281 = math.tanh %280 : vector<8x128xf32>
      %282 = vector.extract_strided_slice %267 {offsets = [0, 384], sizes = [8, 128], strides = [1, 1]} : vector<8x512xf32> to vector<8x128xf32>
      %283 = arith.negf %282 : vector<8x128xf32>
      %284 = math.exp %283 : vector<8x128xf32>
      %cst_82 = arith.constant 1.000000e+00 : f32
      %285 = vector.broadcast %cst_82 : f32 to vector<8x128xf32>
      %286 = arith.addf %285, %284 : vector<8x128xf32>
      %287 = arith.divf %285, %286 : vector<8x128xf32>
      %288 = arith.mulf %279, %256 : vector<8x128xf32>
      %289 = arith.mulf %273, %281 : vector<8x128xf32>
      %290 = arith.addf %288, %289 : vector<8x128xf32>
      %291 = math.tanh %290 : vector<8x128xf32>
      %292 = arith.mulf %287, %291 : vector<8x128xf32>
      %293 = arith.index_cast %262 : i32 to index
      %c0_83 = arith.constant 0 : index
      %294 = vector.load %arg15[%293, %c0_83] : memref<64x128xf32, #tpu.memory_space<vmem>>, vector<8x128xf32>
      tpu.vector_store %arg15[%293, %c0_83], %292 {strides = array<i32>} : memref<64x128xf32, #tpu.memory_space<vmem>>, vector<8x128xf32>,
      %c8_i32_84 = arith.constant 8 : i32
      %c0_85 = arith.constant 0 : index
      %c0_86 = arith.constant 0 : index
      %295 = vector.load %arg12[%c0_85, %c0_86] : memref<8x128xf32, #tpu.memory_space<vmem>>, vector<8x128xf32>
      tpu.vector_store %arg12[%c0_85, %c0_86], %292 {strides = array<i32>} : memref<8x128xf32, #tpu.memory_space<vmem>>, vector<8x128xf32>,
      %c0_87 = arith.constant 0 : index
      %c0_88 = arith.constant 0 : index
      %296 = vector.load %arg13[%c0_87, %c0_88] : memref<8x128xf32, #tpu.memory_space<vmem>>, vector<8x128xf32>
      tpu.vector_store %arg13[%c0_87, %c0_88], %290 {strides = array<i32>} : memref<8x128xf32, #tpu.memory_space<vmem>>, vector<8x128xf32>,
    } else {
    }
    %c0 = arith.constant 0 : index
    %c0_1 = arith.constant 0 : index
    %3 = vector.load %arg15[%c0, %c0_1] : memref<64x128xf32, #tpu.memory_space<vmem>>, vector<64x128xf32>
    %c0_2 = arith.constant 0 : index
    %c0_3 = arith.constant 0 : index
    %4 = vector.load %arg7[%c0_2, %c0_3] : memref<128x128xf32, #tpu.memory_space<vmem>>, vector<128x128xf32>
    %cst = arith.constant dense<0.000000e+00> : vector<64x128xf32>
    %5 = tpu.matmul %3, %4, %cst {dimension_numbers = #tpu.dot_dimension_numbers<[1], [0], [0], [1], [0, 0, 1, 1], [], []>} : vector<64x128xf32>, vector<128x128xf32>, vector<64x128xf32> -> vector<64x128xf32>
    %c0_4 = arith.constant 0 : index
    %c0_5 = arith.constant 0 : index
    %6 = vector.load %arg8[%c0_4, %c0_5] : memref<1x128xf32, #tpu.memory_space<vmem>>, vector<1x128xf32>
    %7 = vector.broadcast %6 : vector<1x128xf32> to vector<64x128xf32>
    %8 = arith.addf %5, %7 : vector<64x128xf32>
    %c0_6 = arith.constant 0 : index
    %c0_7 = arith.constant 0 : index
    %9 = vector.load %arg11[%c0_6, %c0_7] : memref<64x128xf32, #tpu.memory_space<vmem>>, vector<64x128xf32>
    tpu.vector_store %arg11[%c0_6, %c0_7], %8 {strides = array<i32>} : memref<64x128xf32, #tpu.memory_space<vmem>>, vector<64x128xf32>,
    return
  }
  func.func @transform_0(%arg0: i32) -> (i32, i32) {
    %c0_i32 = arith.constant 0 : i32
    %c0_i32_0 = arith.constant 0 : i32
    %c0_i32_1 = arith.constant 0 : i32
    return %c0_i32, %c0_i32_0 : i32, i32
  }
  func.func @transform_1(%arg0: i32) -> (i32, i32) {
    %c0_i32 = arith.constant 0 : i32
    %c0_i32_0 = arith.constant 0 : i32
    %c0_i32_1 = arith.constant 0 : i32
    return %c0_i32, %c0_i32_0 : i32, i32
  }
  func.func @transform_2(%arg0: i32) -> (i32, i32) {
    %c0_i32 = arith.constant 0 : i32
    %c0_i32_0 = arith.constant 0 : i32
    %c0_i32_1 = arith.constant 0 : i32
    return %c0_i32, %c0_i32_0 : i32, i32
  }
  func.func @transform_3(%arg0: i32) -> (i32, i32) {
    %c0_i32 = arith.constant 0 : i32
    %c0_i32_0 = arith.constant 0 : i32
    %c0_i32_1 = arith.constant 0 : i32
    return %c0_i32, %c0_i32_0 : i32, i32
  }
  func.func @transform_4(%arg0: i32) -> (i32, i32) {
    %c0_i32 = arith.constant 0 : i32
    %c0_i32_0 = arith.constant 0 : i32
    %c0_i32_1 = arith.constant 0 : i32
    return %c0_i32, %c0_i32_0 : i32, i32
  }
  func.func @transform_5(%arg0: i32) -> (i32, i32) {
    %c0_i32 = arith.constant 0 : i32
    %c0_i32_0 = arith.constant 0 : i32
    %c0_i32_1 = arith.constant 0 : i32
    return %c0_i32, %c0_i32_0 : i32, i32
  }
  func.func @transform_6(%arg0: i32) -> (i32, i32) {
    %c0_i32 = arith.constant 0 : i32
    %c0_i32_0 = arith.constant 0 : i32
    return %c0_i32, %arg0 : i32, i32
  }
  func.func @transform_7(%arg0: i32) -> (i32, i32) {
    %c0_i32 = arith.constant 0 : i32
    %c0_i32_0 = arith.constant 0 : i32
    return %c0_i32, %arg0 : i32, i32
  }
  func.func @transform_8(%arg0: i32) -> (i32, i32) {
    %c0_i32 = arith.constant 0 : i32
    %c0_i32_0 = arith.constant 0 : i32
    %c0_i32_1 = arith.constant 0 : i32
    return %c0_i32, %c0_i32_0 : i32, i32
  }
  func.func @transform_9(%arg0: i32) -> (i32, i32) {
    %c0_i32 = arith.constant 0 : i32
    %c0_i32_0 = arith.constant 0 : i32
    %c0_i32_1 = arith.constant 0 : i32
    return %c0_i32, %c0_i32_0 : i32, i32
  }
  func.func @transform_10(%arg0: i32) -> (i32, i32) {
    %c0_i32 = arith.constant 0 : i32
    %c0_i32_0 = arith.constant 0 : i32
    return %c0_i32, %arg0 : i32, i32
  }
  func.func @transform_11(%arg0: i32) -> (i32, i32) {
    %c0_i32 = arith.constant 0 : i32
    %c0_i32_0 = arith.constant 0 : i32
    %c0_i32_1 = arith.constant 0 : i32
    return %c0_i32, %c0_i32_0 : i32, i32
  }
  func.func @transform_12(%arg0: i32) -> (i32, i32) {
    %c0_i32 = arith.constant 0 : i32
    %c0_i32_0 = arith.constant 0 : i32
    %c0_i32_1 = arith.constant 0 : i32
    return %c0_i32, %c0_i32_0 : i32, i32
  }
}

</mosaic_0001>

<bundles_post_ra>
// kernel: tpu_custom_call.1
= control target key start
LH: loop header
LB: loop body
LE: loop exit
PB: predicated region body
PF: predicated region fallthrough
CT: control target
= control target key end

     0   :  { %18 = vsyncpa [#allocation5], 0  ;;  %s4009_s0 = inlined_call_operand.vmem [shape: f32[64,16], index: 0, kind: input, shape index: {}]   ;;  %s4010_s1 = inlined_call_operand.vmem [shape: f32[16,512], index: 1, kind: input, shape index: {}]   ;;  %s4011_s2 = inlined_call_operand.vmem [shape: f32[8,16], index: 2, kind: input, shape index: {}]   ;;  %s4012_s3 = inlined_call_operand.hbm [shape: f32[16,512], index: 3, kind: input, shape index: {}]   ;;  %s4013_s4 = inlined_call_operand.vmem [shape: f32[1,512], index: 4, kind: input, shape index: {}]   ;;  %s4014_s5 = inlined_call_operand.hbm [shape: f32[128,512], index: 5, kind: input, shape index: {}]   ;;  %s4015_s6 = inlined_call_operand.hbm [shape: f32[128,128], index: 6, kind: input, shape index: {}]   ;;  %s4016_s7 = inlined_call_operand.vmem [shape: f32[1,128], index: 7, kind: input, shape index: {}]   ;;  %s4017_s8 = inlined_call_operand.vmem [shape: f32[8,128], index: 8, kind: input, shape index: {}]   ;;  %s4018_s9 = inlined_call_operand.vmem [shape: f32[8,128], index: 9, kind: input, shape index: {}]   ;;  %s4019_s10 = inlined_call_operand.hbm [shape: f32[64,128], index: 10, kind: output, shape index: {0}]   ;;  %s4020_s11 = inlined_call_operand.hbm [shape: f32[8,128], index: 11, kind: output, shape index: {1}]   ;;  %s4021_s12 = inlined_call_operand.hbm [shape: f32[8,128], index: 12, kind: output, shape index: {2}]  }
   0x1   :  { %19 = vsyncpa [#allocation8], 0 }
   0x2   :  { %20 = vsyncpa [#allocation6], 0 }
   0x3   :  { %21 = vsyncpa [#allocation12], 0  ;;  %s3301_s21 = smov [#allocation7]   ;;  %s3302_s23 = smov [#allocation4]  }
   0x4   :  { %s47_s22 = sshll.u32 %s3301_s21, 4  ;;  %s33_s24 = sshll.u32 %s3302_s23, 4  ;;  %s48_s22 = int_to_ptr.vmem [resolvable:$true] %s47_s22  ;;  %s3377_s24 = int_to_ptr.vmem [resolvable:$true] %s33_s24 }
   0x5   :  { %s3161_s27 = scalar_lea.hbm %s4014_s5, 8192 }
   0x6   :  { %p3162_p0 = scmp.ne.s32.totalorder %s4014_s5, %s3161_s27  ;;  %p3165_p1 = scmp.lt.u32.totalorder %s3161_s27, %s4014_s5 }
   0x8   :  { %p3167_p2 = pnand %p3165_p1, %p3162_p0 }
   0xa   :  { %3170 = shalt.err (!%p3167_p2)
}
   0xb   :  { %s3171_s14 = scalar_lea.vmem %s48_s22, 8192  ;;  %p3176_p4 = scmp.lt.s32.totalorder %s48_s22, %s48_s22 }
   0xc   :  { %p3172_p3 = scmp.ne.s32.totalorder %s48_s22, %s3171_s14  ;;  %p3177_p5 = scmp.lt.s32.totalorder %s3171_s14, %s3171_s14 }
   0xe   :  { %p3178_p6 = por %p3177_p5, %p3176_p4 }
  0x10   :  { %p3179_p7 = pnand %p3178_p6, %p3172_p3 }
  0x12   :  { %3182 = shalt.err (!%p3179_p7)
}
  0x13   :  { %s3303_s15 = smov 512   ;;  %s3304_s16 = smov 32  }
  0x14   :  { %53 = dma.hbm_to_vmem [thread:$0]  %s4014_s5, 8192, %s48_s22, [#allocation8], %s3303_s15, %s3303_s15, %s3304_s16  }
  0x15   :  { %s3183_s21 = scalar_lea.hbm %s4012_s3, 1024 }
  0x16   :  { %p3184_p8 = scmp.ne.s32.totalorder %s4012_s3, %s3183_s21  ;;  %p3187_p9 = scmp.lt.u32.totalorder %s3183_s21, %s4012_s3 }
  0x18   :  { %p3189_p10 = pnand %p3187_p9, %p3184_p8 }
  0x1a   :  { %3192 = shalt.err (!%p3189_p10)
}
  0x1b   :  { %s3193_s28 = scalar_lea.vmem %s3377_s24, 1024  ;;  %p3198_p12 = scmp.lt.s32.totalorder %s3377_s24, %s3377_s24 }
  0x1c   :  { %p3194_p11 = scmp.ne.s32.totalorder %s3377_s24, %s3193_s28  ;;  %p3199_p13 = scmp.lt.s32.totalorder %s3193_s28, %s3193_s28 }
  0x1e   :  { %p3200_p0 = por %p3199_p13, %p3198_p12 }
  0x20   :  { %p3201_p1 = pnand %p3200_p0, %p3194_p11 }
  0x22   :  { %3204 = shalt.err (!%p3201_p1)
}
  0x23   :  { %39 = dma.hbm_to_vmem [thread:$0]  %s4012_s3, 1024, %s3377_s24, [#allocation5], %s3303_s15, %s3303_s15, %s3304_s16  }
  0x24   :  { %s3305_s29 = smov [#allocation9]   ;;  %s3205_s17 = scalar_lea.hbm %s4015_s6, 2048 }
  0x25   :  { %s59_s30 = sshll.u32 %s3305_s29, 4  ;;  %p3206_p2 = scmp.ne.s32.totalorder %s4015_s6, %s3205_s17  ;;  %s60_s30 = int_to_ptr.vmem [resolvable:$true] %s59_s30 }
  0x26   :  { %p3209_p3 = scmp.lt.u32.totalorder %s3205_s17, %s4015_s6 }
  0x28   :  { %p3211_p4 = pnand %p3209_p3, %p3206_p2 }
  0x2a   :  { %3214 = shalt.err (!%p3211_p4)
}
  0x2b   :  { %s3215_s23 = scalar_lea.vmem %s60_s30, 2048  ;;  %p3220_p6 = scmp.lt.s32.totalorder %s60_s30, %s60_s30 }
  0x2c   :  { %p3216_p5 = scmp.ne.s32.totalorder %s60_s30, %s3215_s23  ;;  %p3221_p7 = scmp.lt.s32.totalorder %s3215_s23, %s3215_s23 }
  0x2e   :  { %p3222_p8 = por %p3221_p7, %p3220_p6 }
  0x30   :  { %p3223_p9 = pnand %p3222_p8, %p3216_p5 }
  0x32   :  { %3226 = shalt.err (!%p3223_p9)
}
  0x33   :  { %s3306_s3 = smov 128   ;;  %s3307_s24 = smov 8  }
  0x34   :  { %65 = dma.hbm_to_vmem [thread:$0]  %s4015_s6, 2048, %s60_s30, [#allocation8], %s3306_s3, %s3306_s3, %s3307_s24  }
  0x35   :  { %3293 = dma.done.wait [#allocation5], 1024  }
  0x36   :  { %3294 = vsyncadd [#allocation5], 4294966272 }
  0x37   :  { %3295 = dma.done.wait [#allocation8], 10240  }
  0x38   :  { %3296 = vsyncadd [#allocation8], 4294957056  ;;  %v3308_v0 = vmov 0.0   ;;  %v94_v1 = vld [vmem:[%s4010_s1 + $0x8] sm:$0xff]  ;;  %v96_v3 = vld [vmem:[%s4010_s1 + $0x18] sm:$0xff]  ;;  %vm101_vm0 = vcmask 130048  }
  0x39   :  { %190 = vmatprep.mubr.f32.mxu0 %v3308_v0  ;;  %303 = vmatprep.mubr.f32.mxu1 %v3308_v0  ;;  %v98_v2 = vld [vmem:[%s4010_s1 + $0x28] sm:$0xff]  ;;  %v100_v5 = vld [vmem:[%s4010_s1 + $0x38] sm:$0xff]  ;;  %v93_v6 = vld [vmem:[%s4010_s1] sm:$0xff] }
  0x3a   :  { %v2398_v4 = vpack.c.bf16 %v98_v2, %v94_v1  ;;  %v97_v7 = vld [vmem:[%s4010_s1 + $0x20] sm:$0xff]  ;;  %v2402_v8 = vpack.c.bf16 %v100_v5, %v96_v3  ;;  %v95_v10 = vld [vmem:[%s4010_s1 + $0x10] sm:$0xff]  ;;  %v386_v14 = vld [vmem:[#allocation4 + $0x8] sm:$0xff] }
  0x3b   :  { %v2400_v9 = vpack.c.bf16 %v97_v7, %v93_v6  ;;  %v99_v11 = vld [vmem:[%s4010_s1 + $0x30] sm:$0xff]  ;;  %v85_v12 = vld [vmem:[%s4009_s0] sm:$0xff]  ;;  %v390_v15 = vld [vmem:[#allocation4 + $0x28] sm:$0xff] }
  0x3c   :  { %2399 = vmatprep.subr.bf16.mxu0 %v2398_v4  ;;  %v2404_v13 = vpack.c.bf16 %v99_v11, %v95_v10  ;;  %v561_v16 = vld [vmem:[#allocation7 + $0x8] sm:$0xff]  ;;  %2403 = vmatprep.subr.bf16.mxu1 %v2402_v8  ;;  %v2406_v17 = vpack.c.bf16 %v390_v15, %v386_v14  ;;  %v385_v19 = vld [vmem:[#allocation4] sm:$0xff]  ;;  %v87_v40 = vld [vmem:[%s4009_s0 + $0x10] sm:$0xff] }
  0x3d   :  { %2401 = vmatpush1.bf16.msra.mxu0 %v2400_v9  ;;  %v565_v18 = vld [vmem:[#allocation7 + $0x28] sm:$0xff]  ;;  %v389_v20 = vld [vmem:[#allocation4 + $0x20] sm:$0xff]  ;;  %v88_v47 = vld [vmem:[%s4009_s0 + $0x18] sm:$0xff] }
  0x3e   :  { %2405 = vmatpush1.bf16.msra.mxu1 %v2404_v13  ;;  %v3452_v21 = vpack.c.bf16 %v565_v18, %v561_v16  ;;  %v2408_v22 = vpack.c.bf16 %v389_v20, %v385_v19  ;;  %v560_v23 = vld [vmem:[#allocation7] sm:$0xff]  ;;  %v569_v26 = vld [vmem:[#allocation7 + $0x48] sm:$0xff]  ;;  %v388_v51 = vld [vmem:[#allocation4 + $0x18] sm:$0xff] }
  0x3f   :  { %v564_v24 = vld [vmem:[#allocation7 + $0x20] sm:$0xff]  ;;  %2407 = vmatprep.subr.bf16.mxu1 %v2406_v17  ;;  %v573_v27 = vld [vmem:[#allocation7 + $0x68] sm:$0xff]  ;;  %v392_v52 = vld [vmem:[#allocation4 + $0x38] sm:$0xff] }
  0x40   :  { %v3454_v25 = vpack.c.bf16 %v564_v24, %v560_v23  ;;  %v568_v28 = vld [vmem:[#allocation7 + $0x40] sm:$0xff]  ;;  %2287 = vmatmul.mubr.msk.f32.vlgmr.msra.gmra.mrb[0].mxu0 %vm101_vm0, %v85_v12  ;;  %2415 = vmatprep.subr.bf16.mxu0 %v3452_v21  ;;  %v3458_v29 = vpack.c.bf16 %v573_v27, %v569_v26  ;;  %v577_v31 = vld [vmem:[#allocation7 + $0x88] sm:$0xff]  ;;  %v2410_v54 = vpack.c.bf16 %v392_v52, %v388_v51  ;;  %v91_v8 = vld [vmem:[%s4009_s0 + $0x30] sm:$0xff] }
  0x41   :  { %v572_v30 = vld [vmem:[#allocation7 + $0x60] sm:$0xff]  ;;  %2295 = vmatmul.mubr.msk.f32.vlgmr.msra.gmra.mrb[0].mxu1 %vm101_vm0, %v85_v12  ;;  %v86_v32 = vld [vmem:[%s4009_s0 + $0x8] sm:$0xff]  ;;  %196 = vmatprep.mubr.f32.mxu0 %v3308_v0  ;;  %v92_v13 = vld [vmem:[%s4009_s0 + $0x38] sm:$0xff] }
  0x42   :  { %2417 = vmatpush1.bf16.msra.mxu0 %v3454_v25  ;;  %v3465_v33 = vpack.c.bf16 %v572_v30, %v568_v28  ;;  %v581_v34 = vld [vmem:[#allocation7 + $0xa8] sm:$0xff]  ;;  %2409 = vmatpush1.bf16.msra.mxu1 %v2408_v22  ;;  %v576_v35 = vld [vmem:[#allocation7 + $0x80] sm:$0xff]  ;;  %v387_v15 = vld [vmem:[#allocation4 + $0x10] sm:$0xff] }
  0x43   :  { %v580_v36 = vld [vmem:[#allocation7 + $0xa0] sm:$0xff]  ;;  %309 = vmatprep.mubr.f32.mxu1 %v3308_v0  ;;  %2419 = vmatprep.subr.bf16.mxu0 %v3458_v29  ;;  %v3470_v37 = vpack.c.bf16 %v581_v34, %v577_v31  ;;  %v585_v38 = vld [vmem:[#allocation7 + $0xc8] sm:$0xff]  ;;  %v391_v16 = vld [vmem:[#allocation4 + $0x30] sm:$0xff] }
  0x44   :  { %2288 = vmatmul.mubr.msk.f32.gmra.mrb[2].mxu0 %vm101_vm0, %v86_v32  ;;  %v589_v39 = vld [vmem:[#allocation7 + $0xe8] sm:$0xff]  ;;  %v3478_v41 = vpack.c.bf16 %v580_v36, %v576_v35  ;;  %v584_v42 = vld [vmem:[#allocation7 + $0xc0] sm:$0xff]  ;;  %2411 = vmatprep.subr.bf16.mxu1 %v2410_v54  ;;  %v563_v17 = vld [vmem:[#allocation7 + $0x18] sm:$0xff]  ;;  %v2412_v22 = vpack.c.bf16 %v391_v16, %v387_v15 }
  0x45   :  { %2296 = vmatmul.mubr.msk.f32.gmra.mrb[2].mxu1 %vm101_vm0, %v86_v32  ;;  %202 = vmatprep.mubr.f32.mxu0 %v3308_v0  ;;  %v588_v43 = vld [vmem:[#allocation7 + $0xe0] sm:$0xff]  ;;  %v3483_v44 = vpack.c.bf16 %v589_v39, %v585_v38  ;;  %v593_v45 = vld [vmem:[#allocation7 + $0x108] sm:$0xff]  ;;  %v567_v18 = vld [vmem:[#allocation7 + $0x38] sm:$0xff] }
  0x46   :  { %2421 = vmatpush1.bf16.msra.mxu0 %v3465_v33  ;;  %315 = vmatprep.mubr.f32.mxu1 %v3308_v0  ;;  %v597_v46 = vld [vmem:[#allocation7 + $0x128] sm:$0xff]  ;;  %v3491_v48 = vpack.c.bf16 %v588_v43, %v584_v42  ;;  %v592_v49 = vld [vmem:[#allocation7 + $0x100] sm:$0xff]  ;;  %v3561_v23 = vpack.c.bf16 %v567_v18, %v563_v17  ;;  %v562_v24 = vld [vmem:[#allocation7 + $0x10] sm:$0xff] }
  0x47   :  { %2423 = vmatprep.subr.bf16.mxu0 %v3470_v37  ;;  %v596_v50 = vld [vmem:[#allocation7 + $0x120] sm:$0xff]  ;;  %v3496_v53 = vpack.c.bf16 %v597_v46, %v593_v45  ;;  %v601_v55 = vld [vmem:[#allocation7 + $0x148] sm:$0xff]  ;;  %v566_v26 = vld [vmem:[#allocation7 + $0x30] sm:$0xff] }
  0x48   :  { %2289 = vmatmul.mubr.msk.f32.gmra.mrb[4].mxu0 %vm101_vm0, %v87_v40  ;;  %v605_v56 = vld [vmem:[#allocation7 + $0x168] sm:$0xff]  ;;  %v89_v57 = vld [vmem:[%s4009_s0 + $0x20] sm:$0xff]  ;;  %v3504_v58 = vpack.c.bf16 %v596_v50, %v592_v49  ;;  %v571_v27 = vld [vmem:[#allocation7 + $0x58] sm:$0xff]  ;;  %v3568_v30 = vpack.c.bf16 %v566_v26, %v562_v24 }
  0x49   :  { %2297 = vmatmul.mubr.msk.f32.gmra.mrb[4].mxu1 %vm101_vm0, %v87_v40  ;;  %208 = vmatprep.mubr.f32.mxu0 %v3308_v0  ;;  %v600_v59 = vld [vmem:[#allocation7 + $0x140] sm:$0xff]  ;;  %v3509_v61 = vpack.c.bf16 %v605_v56, %v601_v55  ;;  %v609_v62 = vld [vmem:[#allocation7 + $0x188] sm:$0xff]  ;;  %v575_v28 = vld [vmem:[#allocation7 + $0x78] sm:$0xff] }
  0x4a   :  { %2425 = vmatpush1.bf16.msra.mxu0 %v3478_v41  ;;  %321 = vmatprep.mubr.f32.mxu1 %v3308_v0  ;;  %v604_v60 = vld [vmem:[#allocation7 + $0x160] sm:$0xff]  ;;  %v613_v63 = vld [vmem:[#allocation7 + $0x1a8] sm:$0xff]  ;;  %v3571_v31 = vpack.c.bf16 %v575_v28, %v571_v27  ;;  %v570_v32 = vld [vmem:[#allocation7 + $0x50] sm:$0xff] }
  0x4b   :  { %2427 = vmatprep.subr.bf16.mxu0 %v3483_v44  ;;  %v90_v1 = vld [vmem:[%s4009_s0 + $0x28] sm:$0xff]  ;;  %v3517_v2 = vpack.c.bf16 %v604_v60, %v600_v59  ;;  %v608_v3 = vld [vmem:[#allocation7 + $0x180] sm:$0xff]  ;;  %v3522_v5 = vpack.c.bf16 %v613_v63, %v609_v62  ;;  %v574_v34 = vld [vmem:[#allocation7 + $0x70] sm:$0xff] }
  0x4c   :  { %2290 = vmatmul.mubr.msk.f32.gmra.mrb[6].mxu0 %vm101_vm0, %v88_v47  ;;  %v612_v4 = vld [vmem:[#allocation7 + $0x1a0] sm:$0xff]  ;;  %v617_v6 = vld [vmem:[#allocation7 + $0x1c8] sm:$0xff]  ;;  %v579_v35 = vld [vmem:[#allocation7 + $0x98] sm:$0xff]  ;;  %v3578_v38 = vpack.c.bf16 %v574_v34, %v570_v32 }
  0x4d   :  { %2298 = vmatmul.mubr.msk.f32.gmra.mrb[6].mxu1 %vm101_vm0, %v88_v47  ;;  %214 = vmatprep.mubr.f32.mxu0 %v3308_v0  ;;  %v621_v7 = vld [vmem:[#allocation7 + $0x1e8] sm:$0xff]  ;;  %v3530_v9 = vpack.c.bf16 %v612_v4, %v608_v3  ;;  %v616_v10 = vld [vmem:[#allocation7 + $0x1c0] sm:$0xff]  ;;  %v583_v36 = vld [vmem:[#allocation7 + $0xb8] sm:$0xff] }
  0x4e   :  { %2429 = vmatpush1.bf16.msra.mxu0 %v3491_v48  ;;  %327 = vmatprep.mubr.f32.mxu1 %v3308_v0  ;;  %v620_v11 = vld [vmem:[#allocation7 + $0x1e0] sm:$0xff]  ;;  %v3535_v12 = vpack.c.bf16 %v621_v7, %v617_v6  ;;  %v3582_v39 = vpack.c.bf16 %v583_v36, %v579_v35  ;;  %v578_v40 = vld [vmem:[#allocation7 + $0x90] sm:$0xff]  ;;  %v587_v43 = vld [vmem:[#allocation7 + $0xd8] sm:$0xff] }
  0x4f   :  { %2431 = vmatprep.subr.bf16.mxu0 %v3496_v53  ;;  %v3543_v14 = vpack.c.bf16 %v620_v11, %v616_v10  ;;  %v3554_v19 = vld [vmem:[%s4017_s8] sm:$0xff]  ;;  %v582_v42 = vld [vmem:[#allocation7 + $0xb0] sm:$0xff]  ;;  %v591_v45 = vld [vmem:[#allocation7 + $0xf8] sm:$0xff] }
  0x50   :  { %2291 = vmatmul.mubr.msk.f32.gmra.mrb[8].mxu0 %vm101_vm0, %v89_v57  ;;  %v384_v20 = vld [vmem:[%s4011_s2] sm:$0xff]  ;;  %v3587_v46 = vpack.c.bf16 %v582_v42, %v578_v40  ;;  %v3591_v47 = vpack.c.bf16 %v591_v45, %v587_v43  ;;  %v586_v49 = vld [vmem:[#allocation7 + $0xd0] sm:$0xff]  ;;  %v595_v51 = vld [vmem:[#allocation7 + $0x118] sm:$0xff] }
  0x51   :  { %2299 = vmatmul.mubr.msk.f32.gmra.mrb[8].mxu1 %vm101_vm0, %v89_v57  ;;  %220 = vmatprep.mubr.f32.mxu0 %v3308_v0  ;;  %v590_v50 = vld [vmem:[#allocation7 + $0xf0] sm:$0xff]  ;;  %v599_v52 = vld [vmem:[#allocation7 + $0x138] sm:$0xff]  ;;  %v393_v34 = vld [vmem:[%s4013_s4] sm:$0xf] }
  0x52   :  { %2433 = vmatpush1.bf16.msra.mxu0 %v3504_v58  ;;  %333 = vmatprep.mubr.f32.mxu1 %v3308_v0  ;;  %v3595_v54 = vpack.c.bf16 %v590_v50, %v586_v49  ;;  %v3599_v55 = vpack.c.bf16 %v599_v52, %v595_v51  ;;  %v594_v56 = vld [vmem:[#allocation7 + $0x110] sm:$0xff]  ;;  %v603_v59 = vld [vmem:[#allocation7 + $0x158] sm:$0xff] }
  0x53   :  { %2435 = vmatprep.subr.bf16.mxu0 %v3509_v61  ;;  %v598_v57 = vld [vmem:[#allocation7 + $0x130] sm:$0xff]  ;;  %v607_v60 = vld [vmem:[#allocation7 + $0x178] sm:$0xff] }
  0x54   :  { %2292 = vmatmul.mubr.msk.f32.gmra.mrb[10].mxu0 %vm101_vm0, %v90_v1  ;;  %v3603_v62 = vpack.c.bf16 %v598_v57, %v594_v56  ;;  %v3607_v63 = vpack.c.bf16 %v607_v60, %v603_v59  ;;  %v606_v3 = vld [vmem:[#allocation7 + $0x170] sm:$0xff]  ;;  %v611_v4 = vld [vmem:[#allocation7 + $0x198] sm:$0xff] }
  0x55   :  { %2300 = vmatmul.mubr.msk.f32.gmra.mrb[10].mxu1 %vm101_vm0, %v90_v1  ;;  %226 = vmatprep.mubr.f32.mxu0 %v3308_v0  ;;  %v602_v1 = vld [vmem:[#allocation7 + $0x150] sm:$0xff]  ;;  %v615_v6 = vld [vmem:[#allocation7 + $0x1b8] sm:$0xff] }
  0x56   :  { %2437 = vmatpush1.bf16.msra.mxu0 %v3517_v2  ;;  %339 = vmatprep.mubr.f32.mxu1 %v3308_v0  ;;  %v3611_v7 = vpack.c.bf16 %v606_v3, %v602_v1  ;;  %v610_v10 = vld [vmem:[#allocation7 + $0x190] sm:$0xff]  ;;  %v623_v15 = vld [vmem:[#allocation7 + $0x1f8] sm:$0xff] }
  0x57   :  { %2439 = vmatprep.subr.bf16.mxu0 %v3522_v5  ;;  %v614_v11 = vld [vmem:[#allocation7 + $0x1b0] sm:$0xff] }
  0x58   :  { %2293 = vmatmul.mubr.msk.f32.gmra.mrb[12].mxu0 %vm101_vm0, %v91_v8  ;;  %v3619_v16 = vpack.c.bf16 %v614_v11, %v610_v10  ;;  %v618_v18 = vld [vmem:[#allocation7 + $0x1d0] sm:$0xff] }
  0x59   :  { %2301 = vmatmul.mubr.msk.f32.gmra.mrb[12].mxu1 %vm101_vm0, %v91_v8  ;;  %232 = vmatprep.mubr.f32.mxu0 %v3308_v0  ;;  %v3615_v8 = vpack.c.bf16 %v615_v6, %v611_v4 }
  0x5a   :  { %2441 = vmatpush1.bf16.msra.mxu0 %v3530_v9  ;;  %345 = vmatprep.mubr.f32.mxu1 %v3308_v0 }
  0x5b   :  { %2443 = vmatprep.subr.bf16.mxu0 %v3535_v12 }
  0x5c   :  { %2294 = vmatmul.mubr.msk.f32.gmra.mrb[14].mxu0 %vm101_vm0, %v92_v13 }
  0x5d   :  { %2302 = vmatmul.mubr.msk.f32.gmra.mrb[14].mxu1 %vm101_vm0, %v92_v13  ;;  %701 = vmatprep.mubr.f32.mxu0 %v3308_v0  ;;  %v619_v13 = vld [vmem:[#allocation7 + $0x1d8] sm:$0xff] }
  0x5e   :  { %2445 = vmatpush1.bf16.msra.mxu0 %v3543_v14  ;;  %482 = vmatprep.mubr.f32.mxu1 %v3308_v0  ;;  %v3623_v17 = vpack.c.bf16 %v623_v15, %v619_v13 }
  0x5f   :  { %2479 = vmatprep.subr.bf16.mxu0 %v3452_v21 }
  0x61   :  { %702 = vmatmul.mubr.f32.vlgmr.msra.gmra.mrb[0].mxu0 %v3554_v19  ;;  %2303 = vmatmul.mubr.msk.f32.vlgmr.msra.gmra.mrb[16].mxu1 %vm101_vm0, %v384_v20 }
  0x62   :  { %2481 = vmatpush1.bf16.msra.mxu0 %v3454_v25  ;;  %2413 = vmatpush1.bf16.msra.mxu1 %v2412_v22 }
  0x63   :  { %553 = vmatprep.mubr.f32.mxu1 %v3308_v0  ;;  %2447 = vmatprep.subr.bf16.mxu1 %v3561_v23 }
  0x64   :  { %2483 = vmatprep.subr.bf16.mxu0 %v3458_v29  ;;  %883 = vmatprep.mubr.f32.mxu0 %v3308_v0 }
  0x65   :  { %2304 = vmatmul.mubr.msk.f32.vlgmr.msra.gmra.mrb[18].mxu1 %vm101_vm0, %v384_v20  ;;  %v622_v20 = vld [vmem:[#allocation7 + $0x1f0] sm:$0xff] }
  0x66   :  { %2485 = vmatpush1.bf16.msra.mxu0 %v3465_v33  ;;  %2449 = vmatpush1.bf16.msra.mxu1 %v3568_v30  ;;  %v3627_v22 = vpack.c.bf16 %v622_v20, %v618_v18 }
  0x67   :  { %772 = vmatprep.mubr.f32.mxu1 %v3308_v0  ;;  %2451 = vmatprep.subr.bf16.mxu1 %v3571_v31 }
  0x68   :  { %2487 = vmatprep.subr.bf16.mxu0 %v3470_v37 }
  0x6a   :  { %2489 = vmatpush1.bf16.msra.mxu0 %v3478_v41  ;;  %2453 = vmatpush1.bf16.msra.mxu1 %v3578_v38 }
  0x6b   :  { %2491 = vmatprep.subr.bf16.mxu0 %v3483_v44  ;;  %2455 = vmatprep.subr.bf16.mxu1 %v3582_v39 }
  0x6e   :  { %2493 = vmatpush1.bf16.msra.mxu0 %v3491_v48  ;;  %2457 = vmatpush1.bf16.msra.mxu1 %v3587_v46 }
  0x6f   :  { %2495 = vmatprep.subr.bf16.mxu0 %v3496_v53  ;;  %2459 = vmatprep.subr.bf16.mxu1 %v3591_v47 }
  0x72   :  { %2497 = vmatpush1.bf16.msra.mxu0 %v3504_v58  ;;  %2461 = vmatpush1.bf16.msra.mxu1 %v3595_v54 }
  0x73   :  { %2499 = vmatprep.subr.bf16.mxu0 %v3509_v61  ;;  %2463 = vmatprep.subr.bf16.mxu1 %v3599_v55 }
  0x76   :  { %2501 = vmatpush1.bf16.msra.mxu0 %v3517_v2  ;;  %2465 = vmatpush1.bf16.msra.mxu1 %v3603_v62 }
  0x77   :  { %2503 = vmatprep.subr.bf16.mxu0 %v3522_v5  ;;  %2467 = vmatprep.subr.bf16.mxu1 %v3607_v63 }
  0x7a   :  { %2505 = vmatpush1.bf16.msra.mxu0 %v3530_v9  ;;  %2469 = vmatpush1.bf16.msra.mxu1 %v3611_v7 }
  0x7b   :  { %2507 = vmatprep.subr.bf16.mxu0 %v3535_v12  ;;  %2471 = vmatprep.subr.bf16.mxu1 %v3615_v8 }
  0x7e   :  { %2509 = vmatpush1.bf16.msra.mxu0 %v3543_v14  ;;  %2473 = vmatpush1.bf16.msra.mxu1 %v3619_v16 }
  0x7f   :  { %2543 = vmatprep.subr.bf16.mxu0 %v3452_v21  ;;  %2475 = vmatprep.subr.bf16.mxu1 %v3623_v17 }
  0x82   :  { %2477 = vmatpush1.bf16.msra.mxu1 %v3627_v22 }
  0x83   :  { %2511 = vmatprep.subr.bf16.mxu1 %v3561_v23 }
  0x85   :  { %773 = vmatmul.mubr.f32.vlgmr.msra.gmra.mrb[0].mxu1 %v3554_v19  ;;  %v395_v19 = vlaneseq }
  0x86   :  { %2513 = vmatpush1.bf16.msra.mxu1 %v3568_v30  ;;  %954 = vmatprep.mubr.f32.mxu1 %v3308_v0 }
  0x87   :  { %2515 = vmatprep.subr.bf16.mxu1 %v3571_v31  ;;  %v396_v24 = vshrl.u32 %v395_v19, 7 }
  0x89   :  { %v401_v28 = vsub.s32 1, %v396_v24  ;;  %v397_v35 = vsub.s32 0, %v396_v24  ;;  %v405_v59 = vsub.s32 2, %v396_v24  ;;  %v409_v60 = vsub.s32 3, %v396_v24 }
  0x8a   :  { %2517 = vmatpush1.bf16.msra.mxu1 %v3578_v38 }
  0x8b   :  { %2519 = vmatprep.subr.bf16.mxu1 %v3582_v39  ;;  %v402_v40 = vrot.slane %v393_v34, %v401_v28  ;;  %v398_v43 = vrot.slane %v393_v34, %v397_v35  ;;  %v406_v4 = vrot.slane %v393_v34, %v405_v59  ;;  %v410_v6 = vrot.slane %v393_v34, %v409_v60  ;;  %v625_v28 = vld [vmem:[%s4018_s9] sm:$0xff] }
  0x8e   :  { %2521 = vmatpush1.bf16.msra.mxu1 %v3587_v46 }
  0x8f   :  { %2523 = vmatprep.subr.bf16.mxu1 %v3591_v47 }
  0x92   :  { %2525 = vmatpush1.bf16.msra.mxu1 %v3595_v54 }
  0x93   :  { %2527 = vmatprep.subr.bf16.mxu1 %v3599_v55 }
  0x96   :  { %2529 = vmatpush1.bf16.msra.mxu1 %v3603_v62 }
  0x97   :  { %2531 = vmatprep.subr.bf16.mxu1 %v3607_v63 }
  0x9a   :  { %2533 = vmatpush1.bf16.msra.mxu1 %v3611_v7 }
  0x9b   :  { %2535 = vmatprep.subr.bf16.mxu1 %v3615_v8 }
  0x9e   :  { %2537 = vmatpush1.bf16.msra.mxu1 %v3619_v16 }
  0x9f   :  { %2539 = vmatprep.subr.bf16.mxu1 %v3623_v17 }
  0xa2   :  { %2541 = vmatpush1.bf16.msra.mxu1 %v3627_v22 }
  0xa3   :  { %2575 = vmatprep.subr.bf16.mxu1 %v3561_v23 }
 0x134   :  { %v703_v26 = vpop.f32.mrb[0].mxu0  ;;  %v484_v27 = vpop.f32.mrb[16].mxu1 }
 0x135   :  { %v705_v32 = vpop.f32.mrb[1].mxu0  ;;  %v486_v36 = vpop.f32.mrb[17].mxu1  ;;  %v3656_v50 = vadd.f32 %v484_v27, %v398_v43 }
 0x136   :  { %v3654_v49 = vadd.f32 %v486_v36, %v402_v40 }
 0x137   :  { %v2958_v52 = vadd.f32 %v703_v26, %v3656_v50 }
 0x138   :  { %v555_v42 = vpop.f32.mrb[18].mxu1  ;;  %v2959_v51 = vadd.f32 %v705_v32, %v3654_v49 }
 0x139   :  { %v557_v45 = vpop.f32.mrb[19].mxu1  ;;  %v2305_v57 = vmul.f32 -1.442695, %v2958_v52  ;;  %v3660_v13 = vadd.f32 %v555_v42, %v406_v4 }
 0x13a   :  { %v2306_v56 = vmul.f32 -1.442695, %v2959_v51  ;;  %v3662_v15 = vadd.f32 %v557_v45, %v410_v6 }
 0x13c   :  { %3033 = vpow2.f32 %v2306_v56 }
 0x13d   :  { %3035 = vpow2.f32 %v2305_v57 }
 0x146   :  { %v3034_v1 = vpop.eup %3033 }
 0x147   :  { %v3036_v3 = vpop.eup %3035  ;;  %v792_v10 = vadd.f32 1.0, %v3034_v1 }
 0x148   :  { %v786_v11 = vadd.f32 1.0, %v3036_v3 }
 0x149   :  { %3037 = vrcp.f32 %v792_v10 }
 0x14a   :  { %3039 = vrcp.f32 %v786_v11 }
 0x153   :  { %v3038_v27 = vpop.eup %3037 }
 0x154   :  { %v3040_v32 = vpop.eup %3039  ;;  %v802_v35 = vmul.f32 %v3038_v27, %v625_v28 }
 0x158   :  { %v774_v18 = vpop.f32.mrb[0].mxu1 }
 0x159   :  { %v2974_v20 = vadd.f32 %v774_v18, %v3660_v13  ;;  %v776_v19 = vpop.f32.mrb[1].mxu1 }
 0x15a   :  { %v2975_v26 = vadd.f32 %v776_v19, %v3662_v15 }
 0x15b   :  { %3041 = vtanh.f32 %v2974_v20 }
 0x15c   :  { %v2307_v24 = vmul.f32 -1.442695, %v2975_v26 }
 0x15e   :  { %3043 = vpow2.f32 %v2307_v24 }
 0x165   :  { %v3042_v34 = vpop.eup %3041 }
 0x166   :  { %v803_v36 = vmul.f32 %v3042_v34, %v3040_v32 }
 0x168   :  { %v3044_v40 = vpop.eup %3043  ;;  %v3669_v42 = vadd.f32 %v803_v36, %v802_v35 }
 0x169   :  { %v799_v43 = vadd.f32 1.0, %v3044_v40 }
 0x16a   :  { %3045 = vtanh.f32 %v3669_v42 }
 0x16b   :  { %3047 = vrcp.f32 %v799_v43 }
 0x174   :  { %v3046_v45 = vpop.eup %3045 }
 0x175   :  { %v3048_v51 = vpop.eup %3047 }
 0x176   :  { %v3672_v52 = vmul.f32 %v3048_v51, %v3046_v45 }
 0x178   :  { %884 = vmatmul.mubr.f32.vlgmr.msra.gmra.mrb[2].mxu0 %v3672_v52  ;;  %955 = vmatmul.mubr.f32.vlgmr.msra.gmra.mrb[2].mxu1 %v3672_v52 }
 0x179   :  { %2545 = vmatpush1.bf16.msra.mxu0 %v3454_v25  ;;  %2577 = vmatpush1.bf16.msra.mxu1 %v3568_v30 }
 0x17a   :  { %2547 = vmatprep.subr.bf16.mxu0 %v3458_v29  ;;  %2579 = vmatprep.subr.bf16.mxu1 %v3571_v31 }
 0x17b   :  { %1066 = vmatprep.mubr.f32.mxu0 %v3308_v0  ;;  %1137 = vmatprep.mubr.f32.mxu1 %v3308_v0 }
 0x17d   :  { %2549 = vmatpush1.bf16.msra.mxu0 %v3465_v33  ;;  %2581 = vmatpush1.bf16.msra.mxu1 %v3578_v38 }
 0x17e   :  { %2551 = vmatprep.subr.bf16.mxu0 %v3470_v37  ;;  %2583 = vmatprep.subr.bf16.mxu1 %v3582_v39 }
 0x181   :  { %2553 = vmatpush1.bf16.msra.mxu0 %v3478_v41  ;;  %2585 = vmatpush1.bf16.msra.mxu1 %v3587_v46 }
 0x182   :  { %2555 = vmatprep.subr.bf16.mxu0 %v3483_v44  ;;  %2587 = vmatprep.subr.bf16.mxu1 %v3591_v47 }
 0x185   :  { %2557 = vmatpush1.bf16.msra.mxu0 %v3491_v48  ;;  %2589 = vmatpush1.bf16.msra.mxu1 %v3595_v54 }
 0x186   :  { %2559 = vmatprep.subr.bf16.mxu0 %v3496_v53  ;;  %2591 = vmatprep.subr.bf16.mxu1 %v3599_v55 }
 0x189   :  { %2561 = vmatpush1.bf16.msra.mxu0 %v3504_v58  ;;  %2593 = vmatpush1.bf16.msra.mxu1 %v3603_v62 }
 0x18a   :  { %2563 = vmatprep.subr.bf16.mxu0 %v3509_v61  ;;  %2595 = vmatprep.subr.bf16.mxu1 %v3607_v63 }
 0x18d   :  { %2565 = vmatpush1.bf16.msra.mxu0 %v3517_v2  ;;  %2597 = vmatpush1.bf16.msra.mxu1 %v3611_v7 }
 0x18e   :  { %2567 = vmatprep.subr.bf16.mxu0 %v3522_v5  ;;  %2599 = vmatprep.subr.bf16.mxu1 %v3615_v8 }
 0x191   :  { %2569 = vmatpush1.bf16.msra.mxu0 %v3530_v9  ;;  %2601 = vmatpush1.bf16.msra.mxu1 %v3619_v16 }
 0x192   :  { %2571 = vmatprep.subr.bf16.mxu0 %v3535_v12  ;;  %2603 = vmatprep.subr.bf16.mxu1 %v3623_v17 }
 0x195   :  { %2573 = vmatpush1.bf16.msra.mxu0 %v3543_v14  ;;  %2605 = vmatpush1.bf16.msra.mxu1 %v3627_v22 }
 0x196   :  { %2607 = vmatprep.subr.bf16.mxu0 %v3452_v21  ;;  %2639 = vmatprep.subr.bf16.mxu1 %v3561_v23 }
 0x24b   :  { %v885_v56 = vpop.f32.mrb[2].mxu0  ;;  %v956_v57 = vpop.f32.mrb[2].mxu1 }
 0x24c   :  { %v2960_v59 = vadd.f32 %v885_v56, %v3656_v50  ;;  %v887_v60 = vpop.f32.mrb[3].mxu0  ;;  %v958_v1 = vpop.f32.mrb[3].mxu1  ;;  %v2976_v18 = vadd.f32 %v956_v57, %v3660_v13 }
 0x24d   :  { %v2961_v3 = vadd.f32 %v887_v60, %v3654_v49  ;;  %v2977_v10 = vadd.f32 %v958_v1, %v3662_v15 }
 0x24e   :  { %v2308_v4 = vmul.f32 -1.442695, %v2960_v59 }
 0x24f   :  { %v2309_v6 = vmul.f32 -1.442695, %v2961_v3  ;;  %v2310_v11 = vmul.f32 -1.442695, %v2977_v10 }
 0x250   :  { %3049 = vpow2.f32 %v2308_v4 }
 0x251   :  { %3051 = vpow2.f32 %v2309_v6 }
 0x252   :  { %3053 = vpow2.f32 %v2310_v11 }
 0x253   :  { %3055 = vtanh.f32 %v2976_v18 }
 0x25a   :  { %v3050_v20 = vpop.eup %3049 }
 0x25b   :  { %v3052_v19 = vpop.eup %3051  ;;  %v968_v26 = vadd.f32 1.0, %v3050_v20 }
 0x25c   :  { %v974_v24 = vadd.f32 1.0, %v3052_v19  ;;  %v3054_v27 = vpop.eup %3053 }
 0x25d   :  { %3057 = vrcp.f32 %v968_v26  ;;  %v3056_v28 = vpop.eup %3055  ;;  %v981_v36 = vadd.f32 1.0, %v3054_v27 }
 0x25e   :  { %3059 = vrcp.f32 %v974_v24 }
 0x25f   :  { %3061 = vrcp.f32 %v981_v36 }
 0x267   :  { %v3058_v32 = vpop.eup %3057 }
 0x268   :  { %v3060_v34 = vpop.eup %3059  ;;  %v985_v35 = vmul.f32 %v3058_v32, %v3056_v28 }
 0x269   :  { %v984_v40 = vmul.f32 %v3060_v34, %v3669_v42  ;;  %v3062_v45 = vpop.eup %3061 }
 0x26b   :  { %v3715_v43 = vadd.f32 %v985_v35, %v984_v40 }
 0x26d   :  { %3063 = vtanh.f32 %v3715_v43 }
 0x277   :  { %v3064_v51 = vpop.eup %3063 }
 0x278   :  { %v3718_v56 = vmul.f32 %v3064_v51, %v3062_v45 }
 0x27a   :  { %1067 = vmatmul.mubr.f32.vlgmr.msra.gmra.mrb[4].mxu0 %v3718_v56  ;;  %1138 = vmatmul.mubr.f32.vlgmr.msra.gmra.mrb[4].mxu1 %v3718_v56 }
 0x27b   :  { %2609 = vmatpush1.bf16.msra.mxu0 %v3454_v25  ;;  %2641 = vmatpush1.bf16.msra.mxu1 %v3568_v30 }
 0x27c   :  { %2611 = vmatprep.subr.bf16.mxu0 %v3458_v29  ;;  %2643 = vmatprep.subr.bf16.mxu1 %v3571_v31 }
 0x27d   :  { %1249 = vmatprep.mubr.f32.mxu0 %v3308_v0  ;;  %1320 = vmatprep.mubr.f32.mxu1 %v3308_v0 }
 0x27f   :  { %2613 = vmatpush1.bf16.msra.mxu0 %v3465_v33  ;;  %2645 = vmatpush1.bf16.msra.mxu1 %v3578_v38 }
 0x280   :  { %2615 = vmatprep.subr.bf16.mxu0 %v3470_v37  ;;  %2647 = vmatprep.subr.bf16.mxu1 %v3582_v39 }
 0x283   :  { %2617 = vmatpush1.bf16.msra.mxu0 %v3478_v41  ;;  %2649 = vmatpush1.bf16.msra.mxu1 %v3587_v46 }
 0x284   :  { %2619 = vmatprep.subr.bf16.mxu0 %v3483_v44  ;;  %2651 = vmatprep.subr.bf16.mxu1 %v3591_v47 }
 0x287   :  { %2621 = vmatpush1.bf16.msra.mxu0 %v3491_v48  ;;  %2653 = vmatpush1.bf16.msra.mxu1 %v3595_v54 }
 0x288   :  { %2623 = vmatprep.subr.bf16.mxu0 %v3496_v53  ;;  %2655 = vmatprep.subr.bf16.mxu1 %v3599_v55 }
 0x28b   :  { %2625 = vmatpush1.bf16.msra.mxu0 %v3504_v58  ;;  %2657 = vmatpush1.bf16.msra.mxu1 %v3603_v62 }
 0x28c   :  { %2627 = vmatprep.subr.bf16.mxu0 %v3509_v61  ;;  %2659 = vmatprep.subr.bf16.mxu1 %v3607_v63 }
 0x28f   :  { %2629 = vmatpush1.bf16.msra.mxu0 %v3517_v2  ;;  %2661 = vmatpush1.bf16.msra.mxu1 %v3611_v7 }
 0x290   :  { %2631 = vmatprep.subr.bf16.mxu0 %v3522_v5  ;;  %2663 = vmatprep.subr.bf16.mxu1 %v3615_v8 }
 0x293   :  { %2633 = vmatpush1.bf16.msra.mxu0 %v3530_v9  ;;  %2665 = vmatpush1.bf16.msra.mxu1 %v3619_v16 }
 0x294   :  { %2635 = vmatprep.subr.bf16.mxu0 %v3535_v12  ;;  %2667 = vmatprep.subr.bf16.mxu1 %v3623_v17 }
 0x297   :  { %2637 = vmatpush1.bf16.msra.mxu0 %v3543_v14  ;;  %2669 = vmatpush1.bf16.msra.mxu1 %v3627_v22 }
 0x298   :  { %2671 = vmatprep.subr.bf16.mxu0 %v3452_v21  ;;  %2703 = vmatprep.subr.bf16.mxu1 %v3561_v23 }
 0x34d   :  { %v1068_v42 = vpop.f32.mrb[4].mxu0  ;;  %v1139_v57 = vpop.f32.mrb[4].mxu1 }
 0x34e   :  { %v2962_v59 = vadd.f32 %v1068_v42, %v3656_v50  ;;  %v1070_v60 = vpop.f32.mrb[5].mxu0  ;;  %v1141_v1 = vpop.f32.mrb[5].mxu1  ;;  %v2978_v18 = vadd.f32 %v1139_v57, %v3660_v13 }
 0x34f   :  { %v2963_v3 = vadd.f32 %v1070_v60, %v3654_v49  ;;  %v2979_v10 = vadd.f32 %v1141_v1, %v3662_v15 }
 0x350   :  { %v2311_v4 = vmul.f32 -1.442695, %v2962_v59 }
 0x351   :  { %v2312_v6 = vmul.f32 -1.442695, %v2963_v3  ;;  %v2313_v11 = vmul.f32 -1.442695, %v2979_v10 }
 0x352   :  { %3065 = vpow2.f32 %v2311_v4 }
 0x353   :  { %3067 = vpow2.f32 %v2312_v6 }
 0x354   :  { %3069 = vpow2.f32 %v2313_v11 }
 0x355   :  { %3071 = vtanh.f32 %v2978_v18 }
 0x35c   :  { %v3066_v20 = vpop.eup %3065 }
 0x35d   :  { %v3068_v19 = vpop.eup %3067  ;;  %v1151_v26 = vadd.f32 1.0, %v3066_v20 }
 0x35e   :  { %v1157_v24 = vadd.f32 1.0, %v3068_v19  ;;  %v3070_v27 = vpop.eup %3069 }
 0x35f   :  { %3073 = vrcp.f32 %v1151_v26  ;;  %v3072_v28 = vpop.eup %3071  ;;  %v1164_v36 = vadd.f32 1.0, %v3070_v27 }
 0x360   :  { %3075 = vrcp.f32 %v1157_v24 }
 0x361   :  { %3077 = vrcp.f32 %v1164_v36 }
 0x369   :  { %v3074_v32 = vpop.eup %3073 }
 0x36a   :  { %v3076_v34 = vpop.eup %3075  ;;  %v1168_v35 = vmul.f32 %v3074_v32, %v3072_v28 }
 0x36b   :  { %v1167_v40 = vmul.f32 %v3076_v34, %v3715_v43  ;;  %v3078_v51 = vpop.eup %3077 }
 0x36d   :  { %v3761_v45 = vadd.f32 %v1168_v35, %v1167_v40 }
 0x36f   :  { %3079 = vtanh.f32 %v3761_v45 }
 0x379   :  { %v3080_v42 = vpop.eup %3079 }
 0x37a   :  { %v3764_v57 = vmul.f32 %v3080_v42, %v3078_v51 }
 0x37c   :  { %1250 = vmatmul.mubr.f32.vlgmr.msra.gmra.mrb[6].mxu0 %v3764_v57  ;;  %1321 = vmatmul.mubr.f32.vlgmr.msra.gmra.mrb[6].mxu1 %v3764_v57 }
 0x37d   :  { %2673 = vmatpush1.bf16.msra.mxu0 %v3454_v25  ;;  %2705 = vmatpush1.bf16.msra.mxu1 %v3568_v30 }
 0x37e   :  { %2675 = vmatprep.subr.bf16.mxu0 %v3458_v29  ;;  %2707 = vmatprep.subr.bf16.mxu1 %v3571_v31 }
 0x37f   :  { %1432 = vmatprep.mubr.f32.mxu0 %v3308_v0  ;;  %1503 = vmatprep.mubr.f32.mxu1 %v3308_v0 }
 0x381   :  { %2677 = vmatpush1.bf16.msra.mxu0 %v3465_v33  ;;  %2709 = vmatpush1.bf16.msra.mxu1 %v3578_v38 }
 0x382   :  { %2679 = vmatprep.subr.bf16.mxu0 %v3470_v37  ;;  %2711 = vmatprep.subr.bf16.mxu1 %v3582_v39 }
 0x385   :  { %2681 = vmatpush1.bf16.msra.mxu0 %v3478_v41  ;;  %2713 = vmatpush1.bf16.msra.mxu1 %v3587_v46 }
 0x386   :  { %2683 = vmatprep.subr.bf16.mxu0 %v3483_v44  ;;  %2715 = vmatprep.subr.bf16.mxu1 %v3591_v47 }
 0x389   :  { %2685 = vmatpush1.bf16.msra.mxu0 %v3491_v48  ;;  %2717 = vmatpush1.bf16.msra.mxu1 %v3595_v54 }
 0x38a   :  { %2687 = vmatprep.subr.bf16.mxu0 %v3496_v53  ;;  %2719 = vmatprep.subr.bf16.mxu1 %v3599_v55 }
 0x38d   :  { %2689 = vmatpush1.bf16.msra.mxu0 %v3504_v58  ;;  %2721 = vmatpush1.bf16.msra.mxu1 %v3603_v62 }
 0x38e   :  { %2691 = vmatprep.subr.bf16.mxu0 %v3509_v61  ;;  %2723 = vmatprep.subr.bf16.mxu1 %v3607_v63 }
 0x391   :  { %2693 = vmatpush1.bf16.msra.mxu0 %v3517_v2  ;;  %2725 = vmatpush1.bf16.msra.mxu1 %v3611_v7 }
 0x392   :  { %2695 = vmatprep.subr.bf16.mxu0 %v3522_v5  ;;  %2727 = vmatprep.subr.bf16.mxu1 %v3615_v8 }
 0x395   :  { %2697 = vmatpush1.bf16.msra.mxu0 %v3530_v9  ;;  %2729 = vmatpush1.bf16.msra.mxu1 %v3619_v16 }
 0x396   :  { %2699 = vmatprep.subr.bf16.mxu0 %v3535_v12  ;;  %2731 = vmatprep.subr.bf16.mxu1 %v3623_v17 }
 0x399   :  { %2701 = vmatpush1.bf16.msra.mxu0 %v3543_v14  ;;  %2733 = vmatpush1.bf16.msra.mxu1 %v3627_v22 }
 0x39a   :  { %2735 = vmatprep.subr.bf16.mxu0 %v3452_v21  ;;  %2767 = vmatprep.subr.bf16.mxu1 %v3561_v23 }
 0x44f   :  { %v1251_v43 = vpop.f32.mrb[6].mxu0  ;;  %v1322_v59 = vpop.f32.mrb[6].mxu1 }
 0x450   :  { %v2964_v60 = vadd.f32 %v1251_v43, %v3656_v50  ;;  %v1253_v1 = vpop.f32.mrb[7].mxu0  ;;  %v1324_v3 = vpop.f32.mrb[7].mxu1  ;;  %v2980_v20 = vadd.f32 %v1322_v59, %v3660_v13 }
 0x451   :  { %v2965_v4 = vadd.f32 %v1253_v1, %v3654_v49  ;;  %v2981_v11 = vadd.f32 %v1324_v3, %v3662_v15 }
 0x452   :  { %v2314_v6 = vmul.f32 -1.442695, %v2964_v60 }
 0x453   :  { %v2315_v10 = vmul.f32 -1.442695, %v2965_v4  ;;  %v2316_v18 = vmul.f32 -1.442695, %v2981_v11 }
 0x454   :  { %3081 = vpow2.f32 %v2314_v6 }
 0x455   :  { %3083 = vpow2.f32 %v2315_v10 }
 0x456   :  { %3085 = vpow2.f32 %v2316_v18 }
 0x457   :  { %3087 = vtanh.f32 %v2980_v20 }
 0x45e   :  { %v3082_v19 = vpop.eup %3081 }
 0x45f   :  { %v3084_v26 = vpop.eup %3083  ;;  %v1334_v24 = vadd.f32 1.0, %v3082_v19 }
 0x460   :  { %v1340_v27 = vadd.f32 1.0, %v3084_v26  ;;  %v3086_v28 = vpop.eup %3085 }
 0x461   :  { %3089 = vrcp.f32 %v1334_v24  ;;  %v3088_v32 = vpop.eup %3087  ;;  %v1347_v40 = vadd.f32 1.0, %v3086_v28 }
 0x462   :  { %3091 = vrcp.f32 %v1340_v27 }
 0x463   :  { %3093 = vrcp.f32 %v1347_v40 }
 0x46b   :  { %v3090_v34 = vpop.eup %3089 }
 0x46c   :  { %v3092_v35 = vpop.eup %3091  ;;  %v1351_v36 = vmul.f32 %v3090_v34, %v3088_v32 }
 0x46d   :  { %v1350_v51 = vmul.f32 %v3092_v35, %v3761_v45  ;;  %v3094_v43 = vpop.eup %3093 }
 0x46f   :  { %v3807_v42 = vadd.f32 %v1351_v36, %v1350_v51 }
 0x471   :  { %3095 = vtanh.f32 %v3807_v42 }
 0x47b   :  { %v3096_v59 = vpop.eup %3095 }
 0x47c   :  { %v3810_v60 = vmul.f32 %v3096_v59, %v3094_v43 }
 0x47e   :  { %1433 = vmatmul.mubr.f32.vlgmr.msra.gmra.mrb[8].mxu0 %v3810_v60  ;;  %1504 = vmatmul.mubr.f32.vlgmr.msra.gmra.mrb[8].mxu1 %v3810_v60 }
 0x47f   :  { %2737 = vmatpush1.bf16.msra.mxu0 %v3454_v25  ;;  %2769 = vmatpush1.bf16.msra.mxu1 %v3568_v30 }
 0x480   :  { %2739 = vmatprep.subr.bf16.mxu0 %v3458_v29  ;;  %2771 = vmatprep.subr.bf16.mxu1 %v3571_v31 }
 0x481   :  { %1615 = vmatprep.mubr.f32.mxu0 %v3308_v0  ;;  %1686 = vmatprep.mubr.f32.mxu1 %v3308_v0 }
 0x483   :  { %2741 = vmatpush1.bf16.msra.mxu0 %v3465_v33  ;;  %2773 = vmatpush1.bf16.msra.mxu1 %v3578_v38 }
 0x484   :  { %2743 = vmatprep.subr.bf16.mxu0 %v3470_v37  ;;  %2775 = vmatprep.subr.bf16.mxu1 %v3582_v39 }
 0x487   :  { %2745 = vmatpush1.bf16.msra.mxu0 %v3478_v41  ;;  %2777 = vmatpush1.bf16.msra.mxu1 %v3587_v46 }
 0x488   :  { %2747 = vmatprep.subr.bf16.mxu0 %v3483_v44  ;;  %2779 = vmatprep.subr.bf16.mxu1 %v3591_v47 }
 0x48b   :  { %2749 = vmatpush1.bf16.msra.mxu0 %v3491_v48  ;;  %2781 = vmatpush1.bf16.msra.mxu1 %v3595_v54 }
 0x48c   :  { %2751 = vmatprep.subr.bf16.mxu0 %v3496_v53  ;;  %2783 = vmatprep.subr.bf16.mxu1 %v3599_v55 }
 0x48f   :  { %2753 = vmatpush1.bf16.msra.mxu0 %v3504_v58  ;;  %2785 = vmatpush1.bf16.msra.mxu1 %v3603_v62 }
 0x490   :  { %2755 = vmatprep.subr.bf16.mxu0 %v3509_v61  ;;  %2787 = vmatprep.subr.bf16.mxu1 %v3607_v63 }
 0x493   :  { %2757 = vmatpush1.bf16.msra.mxu0 %v3517_v2  ;;  %2789 = vmatpush1.bf16.msra.mxu1 %v3611_v7 }
 0x494   :  { %2759 = vmatprep.subr.bf16.mxu0 %v3522_v5  ;;  %2791 = vmatprep.subr.bf16.mxu1 %v3615_v8 }
 0x497   :  { %2761 = vmatpush1.bf16.msra.mxu0 %v3530_v9  ;;  %2793 = vmatpush1.bf16.msra.mxu1 %v3619_v16 }
 0x498   :  { %2763 = vmatprep.subr.bf16.mxu0 %v3535_v12  ;;  %2795 = vmatprep.subr.bf16.mxu1 %v3623_v17 }
 0x49b   :  { %2765 = vmatpush1.bf16.msra.mxu0 %v3543_v14  ;;  %2797 = vmatpush1.bf16.msra.mxu1 %v3627_v22 }
 0x49c   :  { %2799 = vmatprep.subr.bf16.mxu0 %v3452_v21  ;;  %2831 = vmatprep.subr.bf16.mxu1 %v3561_v23 }
 0x551   :  { %v1434_v45 = vpop.f32.mrb[8].mxu0  ;;  %v1505_v1 = vpop.f32.mrb[8].mxu1 }
 0x552   :  { %v2966_v3 = vadd.f32 %v1434_v45, %v3656_v50  ;;  %v1436_v4 = vpop.f32.mrb[9].mxu0  ;;  %v1507_v6 = vpop.f32.mrb[9].mxu1  ;;  %v2982_v26 = vadd.f32 %v1505_v1, %v3660_v13 }
 0x553   :  { %v2967_v10 = vadd.f32 %v1436_v4, %v3654_v49  ;;  %v2983_v20 = vadd.f32 %v1507_v6, %v3662_v15 }
 0x554   :  { %v2317_v11 = vmul.f32 -1.442695, %v2966_v3 }
 0x555   :  { %v2318_v18 = vmul.f32 -1.442695, %v2967_v10  ;;  %v2319_v19 = vmul.f32 -1.442695, %v2983_v20 }
 0x556   :  { %3097 = vpow2.f32 %v2317_v11 }
 0x557   :  { %3099 = vpow2.f32 %v2318_v18 }
 0x558   :  { %3101 = vpow2.f32 %v2319_v19 }
 0x559   :  { %3103 = vtanh.f32 %v2982_v26 }
 0x560   :  { %v3098_v24 = vpop.eup %3097 }
 0x561   :  { %v3100_v27 = vpop.eup %3099  ;;  %v1517_v28 = vadd.f32 1.0, %v3098_v24 }
 0x562   :  { %v1523_v32 = vadd.f32 1.0, %v3100_v27  ;;  %v3102_v34 = vpop.eup %3101 }
 0x563   :  { %3105 = vrcp.f32 %v1517_v28  ;;  %v3104_v35 = vpop.eup %3103  ;;  %v1530_v43 = vadd.f32 1.0, %v3102_v34 }
 0x564   :  { %3107 = vrcp.f32 %v1523_v32 }
 0x565   :  { %3109 = vrcp.f32 %v1530_v43 }
 0x56d   :  { %v3106_v36 = vpop.eup %3105 }
 0x56e   :  { %v3108_v40 = vpop.eup %3107  ;;  %v1534_v51 = vmul.f32 %v3106_v36, %v3104_v35 }
 0x56f   :  { %v1533_v59 = vmul.f32 %v3108_v40, %v3807_v42  ;;  %v3110_v1 = vpop.eup %3109 }
 0x571   :  { %v3853_v45 = vadd.f32 %v1534_v51, %v1533_v59 }
 0x573   :  { %3111 = vtanh.f32 %v3853_v45 }
 0x57d   :  { %v3112_v3 = vpop.eup %3111 }
 0x57e   :  { %v3856_v4 = vmul.f32 %v3112_v3, %v3110_v1 }
 0x580   :  { %1616 = vmatmul.mubr.f32.vlgmr.msra.gmra.mrb[10].mxu0 %v3856_v4  ;;  %1687 = vmatmul.mubr.f32.vlgmr.msra.gmra.mrb[10].mxu1 %v3856_v4 }
 0x581   :  { %2801 = vmatpush1.bf16.msra.mxu0 %v3454_v25  ;;  %2833 = vmatpush1.bf16.msra.mxu1 %v3568_v30 }
 0x582   :  { %2803 = vmatprep.subr.bf16.mxu0 %v3458_v29  ;;  %2835 = vmatprep.subr.bf16.mxu1 %v3571_v31 }
 0x583   :  { %1798 = vmatprep.mubr.f32.mxu0 %v3308_v0  ;;  %1869 = vmatprep.mubr.f32.mxu1 %v3308_v0 }
 0x585   :  { %2805 = vmatpush1.bf16.msra.mxu0 %v3465_v33  ;;  %2837 = vmatpush1.bf16.msra.mxu1 %v3578_v38 }
 0x586   :  { %2807 = vmatprep.subr.bf16.mxu0 %v3470_v37  ;;  %2839 = vmatprep.subr.bf16.mxu1 %v3582_v39 }
 0x589   :  { %2809 = vmatpush1.bf16.msra.mxu0 %v3478_v41  ;;  %2841 = vmatpush1.bf16.msra.mxu1 %v3587_v46 }
 0x58a   :  { %2811 = vmatprep.subr.bf16.mxu0 %v3483_v44  ;;  %2843 = vmatprep.subr.bf16.mxu1 %v3591_v47 }
 0x58d   :  { %2813 = vmatpush1.bf16.msra.mxu0 %v3491_v48  ;;  %2845 = vmatpush1.bf16.msra.mxu1 %v3595_v54 }
 0x58e   :  { %2815 = vmatprep.subr.bf16.mxu0 %v3496_v53  ;;  %2847 = vmatprep.subr.bf16.mxu1 %v3599_v55 }
 0x591   :  { %2817 = vmatpush1.bf16.msra.mxu0 %v3504_v58  ;;  %2849 = vmatpush1.bf16.msra.mxu1 %v3603_v62 }
 0x592   :  { %2819 = vmatprep.subr.bf16.mxu0 %v3509_v61  ;;  %2851 = vmatprep.subr.bf16.mxu1 %v3607_v63 }
 0x595   :  { %2821 = vmatpush1.bf16.msra.mxu0 %v3517_v2  ;;  %2853 = vmatpush1.bf16.msra.mxu1 %v3611_v7 }
 0x596   :  { %2823 = vmatprep.subr.bf16.mxu0 %v3522_v5  ;;  %2855 = vmatprep.subr.bf16.mxu1 %v3615_v8 }
 0x599   :  { %2825 = vmatpush1.bf16.msra.mxu0 %v3530_v9  ;;  %2857 = vmatpush1.bf16.msra.mxu1 %v3619_v16 }
 0x59a   :  { %2827 = vmatprep.subr.bf16.mxu0 %v3535_v12  ;;  %2859 = vmatprep.subr.bf16.mxu1 %v3623_v17 }
 0x59d   :  { %2829 = vmatpush1.bf16.msra.mxu0 %v3543_v14  ;;  %2861 = vmatpush1.bf16.msra.mxu1 %v3627_v22 }
 0x59e   :  { %2863 = vmatprep.subr.bf16.mxu0 %v3452_v21  ;;  %2895 = vmatprep.subr.bf16.mxu1 %v3561_v23 }
 0x653   :  { %v1617_v42 = vpop.f32.mrb[10].mxu0  ;;  %v1688_v6 = vpop.f32.mrb[10].mxu1 }
 0x654   :  { %v2968_v10 = vadd.f32 %v1617_v42, %v3656_v50  ;;  %v1619_v11 = vpop.f32.mrb[11].mxu0  ;;  %v1690_v18 = vpop.f32.mrb[11].mxu1  ;;  %v2984_v28 = vadd.f32 %v1688_v6, %v3660_v13 }
 0x655   :  { %v2969_v20 = vadd.f32 %v1619_v11, %v3654_v49  ;;  %v2985_v24 = vadd.f32 %v1690_v18, %v3662_v15  ;;  %v2103_v11 = vld [vmem:[#allocation9 + $0x20] sm:$0xff]  ;;  %v2104_v18 = vld [vmem:[#allocation9 + $0x28] sm:$0xff] }
 0x656   :  { %v2320_v19 = vmul.f32 -1.442695, %v2968_v10 }
 0x657   :  { %v2321_v26 = vmul.f32 -1.442695, %v2969_v20  ;;  %v2322_v27 = vmul.f32 -1.442695, %v2985_v24  ;;  %v2934_v20 = vpack.c.bf16 %v2104_v18, %v2103_v11 }
 0x658   :  { %3113 = vpow2.f32 %v2320_v19  ;;  %v2105_v19 = vld [vmem:[#allocation9 + $0x30] sm:$0xff] }
 0x659   :  { %3115 = vpow2.f32 %v2321_v26  ;;  %v2106_v26 = vld [vmem:[#allocation9 + $0x38] sm:$0xff] }
 0x65a   :  { %3117 = vpow2.f32 %v2322_v27  ;;  %v2938_v24 = vpack.c.bf16 %v2106_v26, %v2105_v19  ;;  %v2107_v27 = vld [vmem:[#allocation9 + $0x40] sm:$0xff] }
 0x65b   :  { %3119 = vtanh.f32 %v2984_v28  ;;  %v2108_v28 = vld [vmem:[#allocation9 + $0x48] sm:$0xff] }
 0x662   :  { %v3114_v21 = vpop.eup %3113 }
 0x663   :  { %v3116_v32 = vpop.eup %3115  ;;  %v1700_v23 = vadd.f32 1.0, %v3114_v21  ;;  %v2942_v21 = vpack.c.bf16 %v2108_v28, %v2107_v27 }
 0x664   :  { %v1706_v34 = vadd.f32 1.0, %v3116_v32  ;;  %v3118_v35 = vpop.eup %3117  ;;  %v2109_v32 = vld [vmem:[#allocation9 + $0x50] sm:$0xff] }
 0x665   :  { %3121 = vrcp.f32 %v1700_v23  ;;  %v3120_v36 = vpop.eup %3119  ;;  %v1713_v59 = vadd.f32 1.0, %v3118_v35  ;;  %v2110_v23 = vld [vmem:[#allocation9 + $0x58] sm:$0xff]  ;;  %v2111_v35 = vld [vmem:[#allocation9 + $0x60] sm:$0xff] }
 0x666   :  { %3123 = vrcp.f32 %v1706_v34  ;;  %v2946_v34 = vpack.c.bf16 %v2110_v23, %v2109_v32 }
 0x667   :  { %3125 = vrcp.f32 %v1713_v59 }
 0x66f   :  { %v3122_v40 = vpop.eup %3121 }
 0x670   :  { %v3124_v51 = vpop.eup %3123  ;;  %v1717_v43 = vmul.f32 %v3122_v40, %v3120_v36  ;;  %v2112_v36 = vld [vmem:[#allocation9 + $0x68] sm:$0xff]  ;;  %v2113_v40 = vld [vmem:[#allocation9 + $0x70] sm:$0xff] }
 0x671   :  { %v1716_v1 = vmul.f32 %v3124_v51, %v3853_v45  ;;  %v3126_v42 = vpop.eup %3125  ;;  %v2114_v51 = vld [vmem:[#allocation9 + $0x78] sm:$0xff] }
 0x673   :  { %v3899_v3 = vadd.f32 %v1717_v43, %v1716_v1  ;;  %v2954_v43 = vpack.c.bf16 %v2114_v51, %v2113_v40 }
 0x675   :  { %3127 = vtanh.f32 %v3899_v3 }
 0x67f   :  { %v3128_v6 = vpop.eup %3127 }
 0x680   :  { %v3902_v10 = vmul.f32 %v3128_v6, %v3126_v42 }
 0x682   :  { %1799 = vmatmul.mubr.f32.vlgmr.msra.gmra.mrb[12].mxu0 %v3902_v10  ;;  %1870 = vmatmul.mubr.f32.vlgmr.msra.gmra.mrb[12].mxu1 %v3902_v10 }
 0x683   :  { %2865 = vmatpush1.bf16.msra.mxu0 %v3454_v25  ;;  %2897 = vmatpush1.bf16.msra.mxu1 %v3568_v30  ;;  %v2100_v25 = vld [vmem:[#allocation9 + $0x8] sm:$0xff] }
 0x684   :  { %2867 = vmatprep.subr.bf16.mxu0 %v3458_v29  ;;  %2899 = vmatprep.subr.bf16.mxu1 %v3571_v31 }
 0x685   :  { %1981 = vmatprep.mubr.f32.mxu0 %v3308_v0  ;;  %2052 = vmatprep.mubr.f32.mxu1 %v3308_v0  ;;  %v2099_v0 = vld [vmem:[#allocation9] sm:$0xff] }
 0x686   :  { %v2926_v29 = vpack.c.bf16 %v2100_v25, %v2099_v0 }
 0x687   :  { %2869 = vmatpush1.bf16.msra.mxu0 %v3465_v33  ;;  %2901 = vmatpush1.bf16.msra.mxu1 %v3578_v38 }
 0x688   :  { %2871 = vmatprep.subr.bf16.mxu0 %v3470_v37  ;;  %2903 = vmatprep.subr.bf16.mxu1 %v3582_v39 }
 0x68b   :  { %2873 = vmatpush1.bf16.msra.mxu0 %v3478_v41  ;;  %2905 = vmatpush1.bf16.msra.mxu1 %v3587_v46 }
 0x68c   :  { %2875 = vmatprep.subr.bf16.mxu0 %v3483_v44  ;;  %2907 = vmatprep.subr.bf16.mxu1 %v3591_v47 }
 0x68f   :  { %2877 = vmatpush1.bf16.msra.mxu0 %v3491_v48  ;;  %2909 = vmatpush1.bf16.msra.mxu1 %v3595_v54 }
 0x690   :  { %2879 = vmatprep.subr.bf16.mxu0 %v3496_v53  ;;  %2911 = vmatprep.subr.bf16.mxu1 %v3599_v55 }
 0x693   :  { %2881 = vmatpush1.bf16.msra.mxu0 %v3504_v58  ;;  %2913 = vmatpush1.bf16.msra.mxu1 %v3603_v62 }
 0x694   :  { %2883 = vmatprep.subr.bf16.mxu0 %v3509_v61  ;;  %2915 = vmatprep.subr.bf16.mxu1 %v3607_v63 }
 0x697   :  { %2885 = vmatpush1.bf16.msra.mxu0 %v3517_v2  ;;  %2917 = vmatpush1.bf16.msra.mxu1 %v3611_v7  ;;  %v2101_v7 = vld [vmem:[#allocation9 + $0x10] sm:$0xff] }
 0x698   :  { %2887 = vmatprep.subr.bf16.mxu0 %v3522_v5  ;;  %2919 = vmatprep.subr.bf16.mxu1 %v3615_v8  ;;  %v2102_v8 = vld [vmem:[#allocation9 + $0x18] sm:$0xff] }
 0x699   :  { %v2930_v45 = vpack.c.bf16 %v2102_v8, %v2101_v7 }
 0x69b   :  { %2889 = vmatpush1.bf16.msra.mxu0 %v3530_v9  ;;  %2921 = vmatpush1.bf16.msra.mxu1 %v3619_v16 }
 0x69c   :  { %2891 = vmatprep.subr.bf16.mxu0 %v3535_v12  ;;  %2923 = vmatprep.subr.bf16.mxu1 %v3623_v17 }
 0x69f   :  { %2893 = vmatpush1.bf16.msra.mxu0 %v3543_v14  ;;  %2925 = vmatpush1.bf16.msra.mxu1 %v3627_v22 }
 0x6a0   :  { %2927 = vmatprep.subr.bf16.mxu0 %v2926_v29 }
 0x755   :  { %v1800_v33 = vpop.f32.mrb[12].mxu0  ;;  %v1871_v37 = vpop.f32.mrb[12].mxu1 }
 0x756   :  { %v2970_v41 = vadd.f32 %v1800_v33, %v3656_v50  ;;  %v1802_v44 = vpop.f32.mrb[13].mxu0  ;;  %v1873_v48 = vpop.f32.mrb[13].mxu1  ;;  %v2986_v9 = vadd.f32 %v1871_v37, %v3660_v13 }
 0x757   :  { %v2971_v53 = vadd.f32 %v1802_v44, %v3654_v49  ;;  %v2987_v2 = vadd.f32 %v1873_v48, %v3662_v15 }
 0x758   :  { %v2323_v58 = vmul.f32 -1.442695, %v2970_v41 }
 0x759   :  { %v2324_v61 = vmul.f32 -1.442695, %v2971_v53  ;;  %v2325_v5 = vmul.f32 -1.442695, %v2987_v2 }
 0x75a   :  { %3129 = vpow2.f32 %v2323_v58 }
 0x75b   :  { %3131 = vpow2.f32 %v2324_v61 }
 0x75c   :  { %3133 = vpow2.f32 %v2325_v5 }
 0x75d   :  { %3135 = vtanh.f32 %v2986_v9 }
 0x764   :  { %v3130_v12 = vpop.eup %3129 }
 0x765   :  { %v3132_v14 = vpop.eup %3131  ;;  %v1883_v30 = vadd.f32 1.0, %v3130_v12 }
 0x766   :  { %v1889_v31 = vadd.f32 1.0, %v3132_v14  ;;  %v3134_v38 = vpop.eup %3133 }
 0x767   :  { %3137 = vrcp.f32 %v1883_v30  ;;  %v3136_v39 = vpop.eup %3135  ;;  %v1896_v55 = vadd.f32 1.0, %v3134_v38 }
 0x768   :  { %3139 = vrcp.f32 %v1889_v31 }
 0x769   :  { %3141 = vrcp.f32 %v1896_v55 }
 0x771   :  { %v3138_v46 = vpop.eup %3137 }
 0x772   :  { %v3140_v47 = vpop.eup %3139  ;;  %v1900_v54 = vmul.f32 %v3138_v46, %v3136_v39 }
 0x773   :  { %v1899_v62 = vmul.f32 %v3140_v47, %v3899_v3  ;;  %v3142_v16 = vpop.eup %3141 }
 0x775   :  { %v3943_v63 = vadd.f32 %v1900_v54, %v1899_v62 }
 0x777   :  { %3143 = vtanh.f32 %v3943_v63 }
 0x781   :  { %v3144_v17 = vpop.eup %3143 }
 0x782   :  { %v1903_v22 = vmul.f32 %v3144_v17, %v3142_v16 }
 0x784   :  { %1982 = vmatmul.mubr.f32.vlgmr.msra.gmra.mrb[14].mxu0 %v1903_v22  ;;  %2053 = vmatmul.mubr.f32.vlgmr.msra.gmra.mrb[14].mxu1 %v1903_v22 }
 0x785   :  { %2929 = vmatpush3.bf16.msra.mxu0 %v2926_v29  ;;  %2386 = vmatprep.mubr.f32.mxu0 %v3672_v52  ;;  %v2950_v52 = vpack.c.bf16 %v2112_v36, %v2111_v35 }
 0x786   :  { %2931 = vmatprep.subr.bf16.mxu0 %v2930_v45 }
 0x789   :  { %2933 = vmatpush3.bf16.msra.mxu0 %v2930_v45 }
 0x78a   :  { %2935 = vmatprep.subr.bf16.mxu0 %v2934_v20 }
 0x78d   :  { %2937 = vmatpush3.bf16.msra.mxu0 %v2934_v20 }
 0x78e   :  { %2939 = vmatprep.subr.bf16.mxu0 %v2938_v24 }
 0x791   :  { %2941 = vmatpush3.bf16.msra.mxu0 %v2938_v24 }
 0x792   :  { %2943 = vmatprep.subr.bf16.mxu0 %v2942_v21 }
 0x795   :  { %2945 = vmatpush3.bf16.msra.mxu0 %v2942_v21 }
 0x796   :  { %2947 = vmatprep.subr.bf16.mxu0 %v2946_v34 }
 0x799   :  { %2949 = vmatpush3.bf16.msra.mxu0 %v2946_v34 }
 0x79a   :  { %2951 = vmatprep.subr.bf16.mxu0 %v2950_v52 }
 0x79d   :  { %2953 = vmatpush3.bf16.msra.mxu0 %v2950_v52 }
 0x79e   :  { %2955 = vmatprep.subr.bf16.mxu0 %v2954_v43 }
 0x7a1   :  { %2957 = vmatpush3.bf16.msra.mxu0 %v2954_v43 }
 0x7a4   :  { %2387 = vmatmul.mubr.f32.vlgmr.msra.gmra.mrb[16].mxu0 %v3718_v56 }
 0x7a5   :  { %2389 = vmatprep.mubr.f32.mxu0 %v3764_v57 }
 0x7a8   :  { %2390 = vmatmul.mubr.f32.gmra.mrb[18].mxu0 %v3810_v60 }
 0x7a9   :  { %2392 = vmatprep.mubr.f32.mxu0 %v3856_v4 }
 0x7ac   :  { %2393 = vmatmul.mubr.f32.gmra.mrb[20].mxu0 %v3902_v10 }
 0x7ad   :  { %2395 = vmatprep.mubr.f32.mxu0 %v1903_v22 }
 0x857   :  { %v1983_v59 = vpop.f32.mrb[14].mxu0  ;;  %v2054_v1 = vpop.f32.mrb[14].mxu1 }
 0x858   :  { %v2972_v3 = vadd.f32 %v1983_v59, %v3656_v50  ;;  %v1985_v42 = vpop.f32.mrb[15].mxu0  ;;  %v2056_v6 = vpop.f32.mrb[15].mxu1  ;;  %v2988_v60 = vadd.f32 %v2054_v1, %v3660_v13  ;;  %v3960_v13 = vld [vmem:[%s4016_s7] ss:$0 sm:$0xff]  ;;  %s3309_s7 = smov [#allocation11]  }
 0x859   :  { %v2973_v0 = vadd.f32 %v1985_v42, %v3654_v49  ;;  %v2989_v56 = vadd.f32 %v2056_v6, %v3662_v15  ;;  %s2253_s15 = sshll.u32 %s3309_s7, 4  ;;  %s2254_s15 = int_to_ptr.vmem [resolvable:$true] %s2253_s15 }
 0x85a   :  { %v2326_v25 = vmul.f32 -1.442695, %v2972_v3  ;;  %s3227_s1 = scalar_lea.vmem %s2254_s15, 128  ;;  %p3232_p11 = scmp.lt.s32.totalorder %s2254_s15, %s2254_s15 }
 0x85b   :  { %v2327_v29 = vmul.f32 -1.442695, %v2973_v0  ;;  %v2328_v57 = vmul.f32 -1.442695, %v2989_v56  ;;  %p3228_p10 = scmp.ne.s32.totalorder %s2254_s15, %s3227_s1  ;;  %p3233_p12 = scmp.lt.s32.totalorder %s3227_s1, %s3227_s1 }
 0x85c   :  { %3145 = vpow2.f32 %v2326_v25 }
 0x85d   :  { %3147 = vpow2.f32 %v2327_v29  ;;  %p3234_p13 = por %p3233_p12, %p3232_p11 }
 0x85e   :  { %3149 = vpow2.f32 %v2328_v57 }
 0x85f   :  { %3151 = vtanh.f32 %v2988_v60  ;;  %p3235_p0 = pnand %p3234_p13, %p3228_p10 }
 0x866   :  { %v3146_v4 = vpop.eup %3145 }
 0x867   :  { %v3148_v10 = vpop.eup %3147  ;;  %v2066_v33 = vadd.f32 1.0, %v3146_v4 }
 0x868   :  { %v2072_v37 = vadd.f32 1.0, %v3148_v10  ;;  %v3150_v50 = vpop.eup %3149 }
 0x869   :  { %3153 = vrcp.f32 %v2066_v33  ;;  %v3152_v41 = vpop.eup %3151  ;;  %v2079_v53 = vadd.f32 1.0, %v3150_v50 }
 0x86a   :  { %3155 = vrcp.f32 %v2072_v37 }
 0x86b   :  { %3157 = vrcp.f32 %v2079_v53 }
 0x873   :  { %v3154_v49 = vpop.eup %3153 }
 0x874   :  { %v3156_v44 = vpop.eup %3155  ;;  %v2083_v48 = vmul.f32 %v3154_v49, %v3152_v41 }
 0x875   :  { %v2082_v58 = vmul.f32 %v3156_v44, %v3943_v63  ;;  %v3158_v54 = vpop.eup %3157 }
 0x877   :  { %v2388_v15 = vpop.f32.mrb[16].mxu0  ;;  %v2084_v61 = vadd.f32 %v2083_v48, %v2082_v58 }
 0x878   :  { %v2194_v2 = vadd.f32 %v2388_v15, %v3960_v13  ;;  %v2188_v5 = vpop.f32.mrb[17].mxu0 }
 0x879   :  { %v2189_v9 = vadd.f32 %v3960_v13, %v2188_v5  ;;  %3159 = vtanh.f32 %v2084_v61  ;;  %2090 = vst [vmem:[#allocation13] sm:$0xff] %v2084_v61 }
 0x87a   :  { %2228 = vst [vmem:[#allocation10 + $0x8] sm:$0xff] %v2194_v2 }
 0x87b   :  { %2227 = vst [vmem:[#allocation10] sm:$0xff] %v2189_v9  ;;  %v2391_v12 = vpop.f32.mrb[18].mxu0 }
 0x87c   :  { %v2204_v14 = vadd.f32 %v2391_v12, %v3960_v13  ;;  %v2198_v30 = vpop.f32.mrb[19].mxu0 }
 0x87d   :  { %v2199_v31 = vadd.f32 %v3960_v13, %v2198_v30 }
 0x87e   :  { %2230 = vst [vmem:[#allocation10 + $0x18] sm:$0xff] %v2204_v14 }
 0x87f   :  { %2229 = vst [vmem:[#allocation10 + $0x10] sm:$0xff] %v2199_v31  ;;  %v2394_v38 = vpop.f32.mrb[20].mxu0 }
 0x880   :  { %v2214_v39 = vadd.f32 %v2394_v38, %v3960_v13  ;;  %v2208_v46 = vpop.f32.mrb[21].mxu0 }
 0x881   :  { %v2209_v47 = vadd.f32 %v3960_v13, %v2208_v46 }
 0x882   :  { %2232 = vst [vmem:[#allocation10 + $0x28] sm:$0xff] %v2214_v39 }
 0x883   :  { %v3160_v55 = vpop.eup %3159  ;;  %2231 = vst [vmem:[#allocation10 + $0x20] sm:$0xff] %v2209_v47 }
 0x884   :  { %v2086_v62 = vmul.f32 %v3160_v55, %v3158_v54 }
 0x886   :  { %2396 = vmatmul.mubr.f32.gmra.mrb[22].mxu0 %v2086_v62  ;;  %2089 = vst [vmem:[#allocation11] sm:$0xff] %v2086_v62 }
 0x887   :  { %3238 = shalt.err (!%p3235_p0)
}
 0x888   :  { %s3239_s26 = scalar_lea.hbm %s4020_s11, 128 }
 0x889   :  { %p3240_p1 = scmp.ne.s32.totalorder %s4020_s11, %s3239_s26  ;;  %p3243_p2 = scmp.lt.u32.totalorder %s3239_s26, %s4020_s11 }
 0x88b   :  { %p3245_p3 = pnand %p3243_p2, %p3240_p1 }
 0x88d   :  { %3248 = shalt.err (!%p3245_p3)
}
 0x88e   :  { %2256 = dma.vmem_to_hbm [thread:$0]  %s2254_s15, 128, %s4020_s11, [#allocation12]  }
 0x88f   :  { %s3310_s30 = smov [#allocation13]  }
 0x890   :  { %s2263_s13 = sshll.u32 %s3310_s30, 4  ;;  %s2264_s13 = int_to_ptr.vmem [resolvable:$true] %s2263_s13 }
 0x891   :  { %s3249_s14 = scalar_lea.vmem %s2264_s13, 128  ;;  %p3254_p5 = scmp.lt.s32.totalorder %s2264_s13, %s2264_s13 }
 0x892   :  { %p3250_p4 = scmp.ne.s32.totalorder %s2264_s13, %s3249_s14  ;;  %p3255_p6 = scmp.lt.s32.totalorder %s3249_s14, %s3249_s14 }
 0x894   :  { %p3256_p7 = por %p3255_p6, %p3254_p5 }
 0x896   :  { %p3257_p8 = pnand %p3256_p7, %p3250_p4 }
 0x898   :  { %3260 = shalt.err (!%p3257_p8)
}
 0x899   :  { %s3261_s0 = scalar_lea.hbm %s4021_s12, 128 }
 0x89a   :  { %p3262_p9 = scmp.ne.s32.totalorder %s4021_s12, %s3261_s0  ;;  %p3265_p10 = scmp.lt.u32.totalorder %s3261_s0, %s4021_s12 }
 0x89c   :  { %p3267_p11 = pnand %p3265_p10, %p3262_p9 }
 0x89e   :  { %3270 = shalt.err (!%p3267_p11)
}
 0x89f   :  { %2266 = dma.vmem_to_hbm [thread:$0]  %s2264_s13, 128, %s4021_s12, [#allocation12]  }
 0x8a0   :  { %s3311_s21 = smov [#allocation10]  }
 0x8a1   :  { %s2240_s9 = sshll.u32 %s3311_s21, 4  ;;  %s2241_s9 = int_to_ptr.vmem [resolvable:$true] %s2240_s9 }
 0x8a2   :  { %s3271_s23 = scalar_lea.vmem %s2241_s9, 1024  ;;  %p3276_p13 = scmp.lt.s32.totalorder %s2241_s9, %s2241_s9 }
 0x8a3   :  { %p3272_p12 = scmp.ne.s32.totalorder %s2241_s9, %s3271_s23  ;;  %p3277_p0 = scmp.lt.s32.totalorder %s3271_s23, %s3271_s23 }
 0x8a5   :  { %p3278_p1 = por %p3277_p0, %p3276_p13 }
 0x8a7   :  { %p3279_p2 = pnand %p3278_p1, %p3272_p12 }
 0x959   :  { %v2397_v63 = vpop.f32.mrb[22].mxu0 }
 0x95a   :  { %v2224_v7 = vadd.f32 %v2397_v63, %v3960_v13  ;;  %v2218_v8 = vpop.f32.mrb[23].mxu0 }
 0x95b   :  { %v2219_v16 = vadd.f32 %v3960_v13, %v2218_v8 }
 0x95c   :  { %2234 = vst [vmem:[#allocation10 + $0x38] sm:$0xff] %v2224_v7 }
 0x95d   :  { %2233 = vst [vmem:[#allocation10 + $0x30] sm:$0xff] %v2219_v16 }
 0x95e   :  { %3282 = shalt.err (!%p3279_p2)
}
 0x95f   :  { %s3283_s15 = scalar_lea.hbm %s4019_s10, 1024 }
 0x960   :  { %p3284_p3 = scmp.ne.s32.totalorder %s4019_s10, %s3283_s15  ;;  %p3287_p4 = scmp.lt.u32.totalorder %s3283_s15, %s4019_s10 }
 0x962   :  { %p3289_p5 = pnand %p3287_p4, %p3284_p3 }
 0x964   :  { %3292 = shalt.err (!%p3289_p5)
}
 0x965   :  { %2246 = dma.vmem_to_hbm [thread:$0]  %s2241_s9, 1024, %s4019_s10, [#allocation6], %s3306_s3, %s3306_s3, %s3307_s24  }
 0x966   :  { %3297 = dma.done.wait [#allocation6], 1024  }
 0x967   :  { %3298 = vsyncadd [#allocation6], 4294966272 }
 0x968   :  { %3299 = dma.done.wait [#allocation12], 256  }
 0x969   :  { %3300 = vsyncadd [#allocation12], 4294967040 }
 0x96a   :  { %2276 = vsyncpa [#allocation5], 1 }
 0x96b   :  { %2277 = vsyncpa [#allocation8], 1 }
 0x96c   :  { %2278 = vsyncpa [#allocation6], 1 }
 0x96d   :  { %2279 = vsyncpa [#allocation12], 1 }

</bundles_post_ra>
